<compile_context>
chip_gen: v7x
topology: tpu7x:2x2x1
jax: 0.10.0
libtpu: 0.0.40
codegen_flags: <defaults>
</compile_context>

<pallas_src>
import numpy as np
import jax
import jax.numpy as jnp
from jax.experimental import pallas as pl
from jax.experimental.pallas import tpu as pltpu


# ----------------------------------------------------------------------------
# Fused LeNet kernel: one grid step == one sample, conv1 .. f7 end to end.
# ----------------------------------------------------------------------------
def _lenet_kernel(x_ref, m1_ref, b1_ref, pl1_ref, pw1_ref,
                  m2_ref, b2_ref, pl2_ref, pw2_ref,
                  w5_ref, b5_ref, w6_ref, b6_ref, w7_ref, b7_ref,
                  out_ref, pad_ref):
    f32 = jnp.float32
    bf16 = jnp.bfloat16

    def mm(a, b):
        # bf16 operands on the MXU, f32 accumulation.
        return jnp.dot(a.astype(bf16), b.astype(bf16), preferred_element_type=f32)

    def sigmoid(v):
        # exp and approx reciprocal both go to the EUP slot (no VPU divide).
        return pl.reciprocal(1.0 + jnp.exp(-v), approx=True)

    # conv1 padding=2: width padding is folded into M1; height padding is two
    # zero rows above/below the sample in a tiny VMEM scratch.
    pad_ref[...] = jnp.zeros_like(pad_ref)
    pad_ref[2:30, :] = x_ref[0, 0, :, :]

    # c1: Conv2d(1->6, k=5, pad=2) as ONE fused-K matmul: (28,140)@(140,168).
    lhs1 = jnp.concatenate([pad_ref[ky:ky + 28, :] for ky in range(5)], axis=1)
    h = sigmoid(mm(lhs1, m1_ref[...]) + b1_ref[...])                # (28,168) [oh, ow*6+c]

    # s2: 2x2 avg pool = row-pool (left) x col/channel-pool (right).
    p1 = mm(mm(pl1_ref[...], h), pw1_ref[...])                      # (14,84)  [ph, pw*6+c]

    # c2: Conv2d(6->16, k=5, valid) as ONE fused-K matmul: (10,420)@(420,160).
    lhs2 = jnp.concatenate([p1[ky:ky + 10, :] for ky in range(5)], axis=1)
    g = sigmoid(mm(lhs2, m2_ref[...]) + b2_ref[...])                # (10,160) [oh, ow*16+c]

    # s4: 2x2 avg pool.
    p2 = mm(mm(pl2_ref[...], g), pw2_ref[...])                      # (5,80)   [ph, pw*16+c]

    # flatten (NCHW permutation folded into w5's rows) + f5 + f6 + f7
    # (no activations after the FC layers, matching the reference module).
    feat = jnp.concatenate([p2[p:p + 1, :] for p in range(5)], axis=1)   # (1,400)
    f = mm(feat, w5_ref[...]) + b5_ref[...]                         # (1,120)
    f = mm(f, w6_ref[...]) + b6_ref[...]                            # (1,84)
    f = mm(f, w7_ref[...]) + b7_ref[...]                            # (1,10)

    out_ref[0, :, :] = f.astype(out_ref.dtype)


def _w_spec(shape):
    nd = len(shape)
    return pl.BlockSpec(tuple(shape), lambda b, _nd=nd: (0,) * _nd)


@jax.jit
def lenet_forward(x_nchw, params):
    B = x_nchw.shape[0]
    args = (x_nchw,
            params["m1"], params["b1r"], params["pl1"], params["pw1"],
            params["m2"], params["b2r"], params["pl2"], params["pw2"],
            params["w5"], params["b5"], params["w6"], params["b6"],
            params["w7"], params["b7"])

    in_specs = [pl.BlockSpec((1, 1, 28, 28), lambda b: (b, 0, 0, 0))]
    in_specs += [_w_spec(a.shape) for a in args[1:]]

    out = pl.pallas_call(
        _lenet_kernel,
        out_shape=jax.ShapeDtypeStruct((B, 1, 10), jnp.float32),
        grid=(B,),
        in_specs=in_specs,
        out_specs=pl.BlockSpec((1, 1, 10), lambda b: (b, 0, 0)),
        scratch_shapes=[pltpu.VMEM((32, 28), jnp.float32)],
        compiler_params=pltpu.CompilerParams(
            dimension_semantics=("parallel",)),
    )(*args)
    return out.reshape(B, 10)


# ----------------------------------------------------------------------------
# Parameter construction: PyTorch-layout weights, one-time preprocessing into
# the fused band / pooling / permuted-FC matrices used by the kernel (bf16).
# ----------------------------------------------------------------------------
def init_params(key):
    ks = jax.random.split(key, 10)

    def unif(k, shape, fan_in):
        bound = 1.0 / np.sqrt(float(fan_in))
        return np.asarray(jax.random.uniform(k, shape, jnp.float32, -bound, bound))

    # PyTorch-layout weights (uniform(-1/sqrt(fan_in), +1/sqrt(fan_in))).
    w1 = unif(ks[0], (6, 1, 5, 5), 25)        # (co, ci, kh, kw)
    b1 = unif(ks[1], (6,), 25)
    w2 = unif(ks[2], (16, 6, 5, 5), 150)
    b2 = unif(ks[3], (16,), 150)
    w5 = unif(ks[4], (120, 400), 400)         # (out, in)
    b5 = unif(ks[5], (120,), 400)
    w6 = unif(ks[6], (84, 120), 120)
    b6 = unif(ks[7], (84,), 120)
    w7 = unif(ks[8], (10, 84), 84)
    b7 = unif(ks[9], (10,), 84)

    # conv1 fused band matrix (K stacked over ky, width padding folded in):
    #   M1[ky*28 + wi, ow*6 + co] = w1[co, 0, ky, kx]  with  wi = ow + kx - 2.
    M1 = np.zeros((5 * 28, 28 * 6), np.float32)
    for ky in range(5):
        for kx in range(5):
            for ow in range(28):
                wi = ow + kx - 2
                if 0 <= wi < 28:
                    M1[ky * 28 + wi, ow * 6:(ow + 1) * 6] = w1[:, 0, ky, kx]

    # conv2 fused band matrix (valid conv):
    #   M2[ky*84 + wi*6 + ci, ow*16 + co] = w2[co, ci, ky, kx]  with  wi = ow + kx.
    M2 = np.zeros((5 * 84, 10 * 16), np.float32)
    for ky in range(5):
        for kx in range(5):
            for ow in range(10):
                wi = ow + kx
                M2[ky * 84 + wi * 6:ky * 84 + (wi + 1) * 6,
                   ow * 16:(ow + 1) * 16] = w2[:, :, ky, kx].T

    # 2x2 average-pooling matrices (0.5 entries; their product gives 0.25).
    def pool_rows(n_out):
        m = np.zeros((n_out, 2 * n_out), np.float32)
        for r in range(n_out):
            m[r, 2 * r] = 0.5
            m[r, 2 * r + 1] = 0.5
        return m

    def pool_cols(n_out_w, c):
        m = np.zeros((2 * n_out_w * c, n_out_w * c), np.float32)
        for ow in range(2 * n_out_w):
            for ch in range(c):
                m[ow * c + ch, (ow // 2) * c + ch] = 0.5
        return m

    # f5 with the torch NCHW-flatten permutation folded into its input rows:
    #   kernel flat index ph*80 + pw*16 + co  <->  torch column co*25 + ph*5 + pw.
    w5m = np.zeros((400, 120), np.float32)
    for co in range(16):
        for ph in range(5):
            for pw_ in range(5):
                w5m[ph * 80 + pw_ * 16 + co, :] = w5[:, co * 25 + ph * 5 + pw_]

    bf = jnp.bfloat16
    return dict(
        m1=jnp.asarray(M1, bf),
        b1r=jnp.asarray(np.tile(b1, 28)[None, :]),            # (1,168) f32
        pl1=jnp.asarray(pool_rows(14), bf),                    # (14,28)
        pw1=jnp.asarray(pool_cols(14, 6), bf),                 # (168,84)
        m2=jnp.asarray(M2, bf),
        b2r=jnp.asarray(np.tile(b2, 10)[None, :]),             # (1,160) f32
        pl2=jnp.asarray(pool_rows(5), bf),                     # (5,10)
        pw2=jnp.asarray(pool_cols(5, 16), bf),                 # (160,80)
        w5=jnp.asarray(w5m, bf), b5=jnp.asarray(b5[None, :]),
        w6=jnp.asarray(w6.T, bf), b6=jnp.asarray(b6[None, :]),
        w7=jnp.asarray(w7.T, bf), b7=jnp.asarray(b7[None, :]),
    )


if __name__ == "__main__":
    key = jax.random.PRNGKey(0)
    k_x, k_p = jax.random.split(key)

    # LeNet's classifier (5*5*16 = 400 inputs) pins the input to 1x28x28.
    x = jax.random.normal(k_x, (2, 1, 28, 28), dtype=jnp.float32)
    params = init_params(k_p)

    out = lenet_forward(x, params)
    out = jax.block_until_ready(out)

    assert out.shape == (2, 10), out.shape
    assert bool(jnp.all(jnp.isfinite(out)))
    print("KERNEL_OK")
</pallas_src>

<mosaic_0001>
module attributes {stable_mosaic.version = 11 : i64} {
  func.func @_lenet_kernel(%arg0: i32, %arg1: memref<1x1x28x28xf32, #tpu.memory_space<vmem>>, %arg2: memref<140x168xbf16, #tpu.memory_space<vmem>>, %arg3: memref<1x168xf32, #tpu.memory_space<vmem>>, %arg4: memref<14x28xbf16, #tpu.memory_space<vmem>>, %arg5: memref<168x84xbf16, #tpu.memory_space<vmem>>, %arg6: memref<420x160xbf16, #tpu.memory_space<vmem>>, %arg7: memref<1x160xf32, #tpu.memory_space<vmem>>, %arg8: memref<5x10xbf16, #tpu.memory_space<vmem>>, %arg9: memref<160x80xbf16, #tpu.memory_space<vmem>>, %arg10: memref<400x120xbf16, #tpu.memory_space<vmem>>, %arg11: memref<1x120xf32, #tpu.memory_space<vmem>>, %arg12: memref<120x84xbf16, #tpu.memory_space<vmem>>, %arg13: memref<1x84xf32, #tpu.memory_space<vmem>>, %arg14: memref<84x10xbf16, #tpu.memory_space<vmem>>, %arg15: memref<1x10xf32, #tpu.memory_space<vmem>>, %arg16: memref<1x1x10xf32, #tpu.memory_space<vmem>>, %arg17: memref<32x28xf32, #tpu.memory_space<vmem>>) attributes {dimension_semantics = [#tpu.dimension_semantics<parallel>], iteration_bounds = array<i64: 2>, scalar_prefetch = 0 : i64, scratch_operands = 1 : i64, tpu.core_type = #tpu.core_type<tc>, window_params = [{transform_indices = @transform_0, window_bounds = array<i64: 1, 1, 28, 28>}, {pipeline_mode = #tpu.pipeline_mode<synchronous>, transform_indices = @transform_1, window_bounds = array<i64: 140, 168>}, {pipeline_mode = #tpu.pipeline_mode<synchronous>, transform_indices = @transform_2, window_bounds = array<i64: 1, 168>}, {pipeline_mode = #tpu.pipeline_mode<synchronous>, transform_indices = @transform_3, window_bounds = array<i64: 14, 28>}, {pipeline_mode = #tpu.pipeline_mode<synchronous>, transform_indices = @transform_4, window_bounds = array<i64: 168, 84>}, {pipeline_mode = #tpu.pipeline_mode<synchronous>, transform_indices = @transform_5, window_bounds = array<i64: 420, 160>}, {pipeline_mode = #tpu.pipeline_mode<synchronous>, transform_indices = @transform_6, window_bounds = array<i64: 1, 160>}, {pipeline_mode = #tpu.pipeline_mode<synchronous>, transform_indices = @transform_7, window_bounds = array<i64: 5, 10>}, {pipeline_mode = #tpu.pipeline_mode<synchronous>, transform_indices = @transform_8, window_bounds = array<i64: 160, 80>}, {pipeline_mode = #tpu.pipeline_mode<synchronous>, transform_indices = @transform_9, window_bounds = array<i64: 400, 120>}, {pipeline_mode = #tpu.pipeline_mode<synchronous>, transform_indices = @transform_10, window_bounds = array<i64: 1, 120>}, {pipeline_mode = #tpu.pipeline_mode<synchronous>, transform_indices = @transform_11, window_bounds = array<i64: 120, 84>}, {pipeline_mode = #tpu.pipeline_mode<synchronous>, transform_indices = @transform_12, window_bounds = array<i64: 1, 84>}, {pipeline_mode = #tpu.pipeline_mode<synchronous>, transform_indices = @transform_13, window_bounds = array<i64: 84, 10>}, {pipeline_mode = #tpu.pipeline_mode<synchronous>, transform_indices = @transform_14, window_bounds = array<i64: 1, 10>}, {transform_indices = @transform_15, window_bounds = array<i64: 1, 1, 10>}]} {
    %cst = arith.constant 0.000000e+00 : f32
    %0 = vector.broadcast %cst : f32 to vector<32x28xf32>
    %c0 = arith.constant 0 : index
    %c0_0 = arith.constant 0 : index
    %1 = vector.load %arg17[%c0, %c0_0] : memref<32x28xf32, #tpu.memory_space<vmem>>, vector<32x28xf32>
    tpu.vector_store %arg17[%c0, %c0_0], %0 {strides = array<i32>} : memref<32x28xf32, #tpu.memory_space<vmem>>, vector<32x28xf32>,
    %c0_1 = arith.constant 0 : index
    %c0_2 = arith.constant 0 : index
    %c0_3 = arith.constant 0 : index
    %c0_4 = arith.constant 0 : index
    %2 = vector.load %arg1[%c0_1, %c0_2, %c0_3, %c0_4] : memref<1x1x28x28xf32, #tpu.memory_space<vmem>>, vector<1x1x28x28xf32>
    %3 = vector.shape_cast %2 : vector<1x1x28x28xf32> to vector<28x28xf32>
    %c2 = arith.constant 2 : index
    %c0_5 = arith.constant 0 : index
    %4 = vector.load %arg17[%c2, %c0_5] : memref<32x28xf32, #tpu.memory_space<vmem>>, vector<28x28xf32>
    tpu.vector_store %arg17[%c2, %c0_5], %3 {strides = array<i32>} : memref<32x28xf32, #tpu.memory_space<vmem>>, vector<28x28xf32>,
    %c0_6 = arith.constant 0 : index
    %c0_7 = arith.constant 0 : index
    %5 = vector.load %arg17[%c0_6, %c0_7] : memref<32x28xf32, #tpu.memory_space<vmem>>, vector<28x28xf32>
    %c1 = arith.constant 1 : index
    %c0_8 = arith.constant 0 : index
    %6 = vector.load %arg17[%c1, %c0_8] : memref<32x28xf32, #tpu.memory_space<vmem>>, vector<28x28xf32>
    %c2_9 = arith.constant 2 : index
    %c0_10 = arith.constant 0 : index
    %7 = vector.load %arg17[%c2_9, %c0_10] : memref<32x28xf32, #tpu.memory_space<vmem>>, vector<28x28xf32>
    %c3 = arith.constant 3 : index
    %c0_11 = arith.constant 0 : index
    %8 = vector.load %arg17[%c3, %c0_11] : memref<32x28xf32, #tpu.memory_space<vmem>>, vector<28x28xf32>
    %c4 = arith.constant 4 : index
    %c0_12 = arith.constant 0 : index
    %9 = vector.load %arg17[%c4, %c0_12] : memref<32x28xf32, #tpu.memory_space<vmem>>, vector<28x28xf32>
    %10 = tpu.concatenate %5, %6, %7, %8, %9 in 1 : vector<28x28xf32>, vector<28x28xf32>, vector<28x28xf32>, vector<28x28xf32>, vector<28x28xf32> -> vector<28x140xf32>
    %c0_13 = arith.constant 0 : index
    %c0_14 = arith.constant 0 : index
    %11 = vector.load %arg2[%c0_13, %c0_14] : memref<140x168xbf16, #tpu.memory_space<vmem>>, vector<140x168xbf16>
    %12 = arith.truncf %10 : vector<28x140xf32> to vector<28x140xbf16>
    %cst_15 = arith.constant dense<0.000000e+00> : vector<28x168xf32>
    %13 = tpu.matmul %12, %11, %cst_15 {dimension_numbers = #tpu.dot_dimension_numbers<[1], [0], [0], [1], [0, 0, 1, 1], [], []>} : vector<28x140xbf16>, vector<140x168xbf16>, vector<28x168xf32> -> vector<28x168xf32>
    %c0_16 = arith.constant 0 : index
    %c0_17 = arith.constant 0 : index
    %14 = vector.load %arg3[%c0_16, %c0_17] : memref<1x168xf32, #tpu.memory_space<vmem>>, vector<1x168xf32>
    %15 = vector.broadcast %14 : vector<1x168xf32> to vector<28x168xf32>
    %16 = arith.addf %13, %15 : vector<28x168xf32>
    %cst_18 = arith.constant 0.000000e+00 : f32
    %17 = vector.broadcast %cst_18 : f32 to vector<28x168xf32>
    %18 = arith.subf %17, %16 : vector<28x168xf32>
    %19 = math.exp %18 : vector<28x168xf32>
    %cst_19 = arith.constant 1.000000e+00 : f32
    %20 = vector.broadcast %cst_19 : f32 to vector<28x168xf32>
    %21 = arith.addf %20, %19 : vector<28x168xf32>
    %22 = tpu.reciprocal %21 {approx = true} : vector<28x168xf32> -> vector<28x168xf32>
    %c0_20 = arith.constant 0 : index
    %c0_21 = arith.constant 0 : index
    %23 = vector.load %arg4[%c0_20, %c0_21] : memref<14x28xbf16, #tpu.memory_space<vmem>>, vector<14x28xbf16>
    %24 = arith.truncf %22 : vector<28x168xf32> to vector<28x168xbf16>
    %cst_22 = arith.constant dense<0.000000e+00> : vector<14x168xf32>
    %25 = tpu.matmul %23, %24, %cst_22 {dimension_numbers = #tpu.dot_dimension_numbers<[1], [0], [0], [1], [0, 0, 1, 1], [], []>} : vector<14x28xbf16>, vector<28x168xbf16>, vector<14x168xf32> -> vector<14x168xf32>
    %c0_23 = arith.constant 0 : index
    %c0_24 = arith.constant 0 : index
    %26 = vector.load %arg5[%c0_23, %c0_24] : memref<168x84xbf16, #tpu.memory_space<vmem>>, vector<168x84xbf16>
    %27 = arith.truncf %25 : vector<14x168xf32> to vector<14x168xbf16>
    %cst_25 = arith.constant dense<0.000000e+00> : vector<14x84xf32>
    %28 = tpu.matmul %27, %26, %cst_25 {dimension_numbers = #tpu.dot_dimension_numbers<[1], [0], [0], [1], [0, 0, 1, 1], [], []>} : vector<14x168xbf16>, vector<168x84xbf16>, vector<14x84xf32> -> vector<14x84xf32>
    %29 = vector.extract_strided_slice %28 {offsets = [0, 0], sizes = [10, 84], strides = [1, 1]} : vector<14x84xf32> to vector<10x84xf32>
    %30 = vector.extract_strided_slice %28 {offsets = [1, 0], sizes = [10, 84], strides = [1, 1]} : vector<14x84xf32> to vector<10x84xf32>
    %31 = vector.extract_strided_slice %28 {offsets = [2, 0], sizes = [10, 84], strides = [1, 1]} : vector<14x84xf32> to vector<10x84xf32>
    %32 = vector.extract_strided_slice %28 {offsets = [3, 0], sizes = [10, 84], strides = [1, 1]} : vector<14x84xf32> to vector<10x84xf32>
    %33 = vector.extract_strided_slice %28 {offsets = [4, 0], sizes = [10, 84], strides = [1, 1]} : vector<14x84xf32> to vector<10x84xf32>
    %34 = tpu.concatenate %29, %30, %31, %32, %33 in 1 : vector<10x84xf32>, vector<10x84xf32>, vector<10x84xf32>, vector<10x84xf32>, vector<10x84xf32> -> vector<10x420xf32>
    %c0_26 = arith.constant 0 : index
    %c0_27 = arith.constant 0 : index
    %35 = vector.load %arg6[%c0_26, %c0_27] : memref<420x160xbf16, #tpu.memory_space<vmem>>, vector<420x160xbf16>
    %36 = arith.truncf %34 : vector<10x420xf32> to vector<10x420xbf16>
    %cst_28 = arith.constant dense<0.000000e+00> : vector<10x160xf32>
    %37 = tpu.matmul %36, %35, %cst_28 {dimension_numbers = #tpu.dot_dimension_numbers<[1], [0], [0], [1], [0, 0, 1, 1], [], []>} : vector<10x420xbf16>, vector<420x160xbf16>, vector<10x160xf32> -> vector<10x160xf32>
    %c0_29 = arith.constant 0 : index
    %c0_30 = arith.constant 0 : index
    %38 = vector.load %arg7[%c0_29, %c0_30] : memref<1x160xf32, #tpu.memory_space<vmem>>, vector<1x160xf32>
    %39 = vector.broadcast %38 : vector<1x160xf32> to vector<10x160xf32>
    %40 = arith.addf %37, %39 : vector<10x160xf32>
    %cst_31 = arith.constant 0.000000e+00 : f32
    %41 = vector.broadcast %cst_31 : f32 to vector<10x160xf32>
    %42 = arith.subf %41, %40 : vector<10x160xf32>
    %43 = math.exp %42 : vector<10x160xf32>
    %cst_32 = arith.constant 1.000000e+00 : f32
    %44 = vector.broadcast %cst_32 : f32 to vector<10x160xf32>
    %45 = arith.addf %44, %43 : vector<10x160xf32>
    %46 = tpu.reciprocal %45 {approx = true} : vector<10x160xf32> -> vector<10x160xf32>
    %c0_33 = arith.constant 0 : index
    %c0_34 = arith.constant 0 : index
    %47 = vector.load %arg8[%c0_33, %c0_34] : memref<5x10xbf16, #tpu.memory_space<vmem>>, vector<5x10xbf16>
    %48 = arith.truncf %46 : vector<10x160xf32> to vector<10x160xbf16>
    %cst_35 = arith.constant dense<0.000000e+00> : vector<5x160xf32>
    %49 = tpu.matmul %47, %48, %cst_35 {dimension_numbers = #tpu.dot_dimension_numbers<[1], [0], [0], [1], [0, 0, 1, 1], [], []>} : vector<5x10xbf16>, vector<10x160xbf16>, vector<5x160xf32> -> vector<5x160xf32>
    %c0_36 = arith.constant 0 : index
    %c0_37 = arith.constant 0 : index
    %50 = vector.load %arg9[%c0_36, %c0_37] : memref<160x80xbf16, #tpu.memory_space<vmem>>, vector<160x80xbf16>
    %51 = arith.truncf %49 : vector<5x160xf32> to vector<5x160xbf16>
    %cst_38 = arith.constant dense<0.000000e+00> : vector<5x80xf32>
    %52 = tpu.matmul %51, %50, %cst_38 {dimension_numbers = #tpu.dot_dimension_numbers<[1], [0], [0], [1], [0, 0, 1, 1], [], []>} : vector<5x160xbf16>, vector<160x80xbf16>, vector<5x80xf32> -> vector<5x80xf32>
    %53 = vector.extract_strided_slice %52 {offsets = [0, 0], sizes = [1, 80], strides = [1, 1]} : vector<5x80xf32> to vector<1x80xf32>
    %54 = vector.extract_strided_slice %52 {offsets = [1, 0], sizes = [1, 80], strides = [1, 1]} : vector<5x80xf32> to vector<1x80xf32>
    %55 = vector.extract_strided_slice %52 {offsets = [2, 0], sizes = [1, 80], strides = [1, 1]} : vector<5x80xf32> to vector<1x80xf32>
    %56 = vector.extract_strided_slice %52 {offsets = [3, 0], sizes = [1, 80], strides = [1, 1]} : vector<5x80xf32> to vector<1x80xf32>
    %57 = vector.extract_strided_slice %52 {offsets = [4, 0], sizes = [1, 80], strides = [1, 1]} : vector<5x80xf32> to vector<1x80xf32>
    %58 = tpu.concatenate %53, %54, %55, %56, %57 in 1 : vector<1x80xf32>, vector<1x80xf32>, vector<1x80xf32>, vector<1x80xf32>, vector<1x80xf32> -> vector<1x400xf32>
    %c0_39 = arith.constant 0 : index
    %c0_40 = arith.constant 0 : index
    %59 = vector.load %arg10[%c0_39, %c0_40] : memref<400x120xbf16, #tpu.memory_space<vmem>>, vector<400x120xbf16>
    %60 = arith.truncf %58 : vector<1x400xf32> to vector<1x400xbf16>
    %cst_41 = arith.constant dense<0.000000e+00> : vector<1x120xf32>
    %61 = tpu.matmul %60, %59, %cst_41 {dimension_numbers = #tpu.dot_dimension_numbers<[1], [0], [0], [1], [0, 0, 1, 1], [], []>} : vector<1x400xbf16>, vector<400x120xbf16>, vector<1x120xf32> -> vector<1x120xf32>
    %c0_42 = arith.constant 0 : index
    %c0_43 = arith.constant 0 : index
    %62 = vector.load %arg11[%c0_42, %c0_43] : memref<1x120xf32, #tpu.memory_space<vmem>>, vector<1x120xf32>
    %63 = arith.addf %61, %62 : vector<1x120xf32>
    %c0_44 = arith.constant 0 : index
    %c0_45 = arith.constant 0 : index
    %64 = vector.load %arg12[%c0_44, %c0_45] : memref<120x84xbf16, #tpu.memory_space<vmem>>, vector<120x84xbf16>
    %65 = arith.truncf %63 : vector<1x120xf32> to vector<1x120xbf16>
    %cst_46 = arith.constant dense<0.000000e+00> : vector<1x84xf32>
    %66 = tpu.matmul %65, %64, %cst_46 {dimension_numbers = #tpu.dot_dimension_numbers<[1], [0], [0], [1], [0, 0, 1, 1], [], []>} : vector<1x120xbf16>, vector<120x84xbf16>, vector<1x84xf32> -> vector<1x84xf32>
    %c0_47 = arith.constant 0 : index
    %c0_48 = arith.constant 0 : index
    %67 = vector.load %arg13[%c0_47, %c0_48] : memref<1x84xf32, #tpu.memory_space<vmem>>, vector<1x84xf32>
    %68 = arith.addf %66, %67 : vector<1x84xf32>
    %c0_49 = arith.constant 0 : index
    %c0_50 = arith.constant 0 : index
    %69 = vector.load %arg14[%c0_49, %c0_50] : memref<84x10xbf16, #tpu.memory_space<vmem>>, vector<84x10xbf16>
    %70 = arith.truncf %68 : vector<1x84xf32> to vector<1x84xbf16>
    %cst_51 = arith.constant dense<0.000000e+00> : vector<1x10xf32>
    %71 = tpu.matmul %70, %69, %cst_51 {dimension_numbers = #tpu.dot_dimension_numbers<[1], [0], [0], [1], [0, 0, 1, 1], [], []>} : vector<1x84xbf16>, vector<84x10xbf16>, vector<1x10xf32> -> vector<1x10xf32>
    %c0_52 = arith.constant 0 : index
    %c0_53 = arith.constant 0 : index
    %72 = vector.load %arg15[%c0_52, %c0_53] : memref<1x10xf32, #tpu.memory_space<vmem>>, vector<1x10xf32>
    %73 = arith.addf %71, %72 : vector<1x10xf32>
    %c0_54 = arith.constant 0 : index
    %c0_55 = arith.constant 0 : index
    %c0_56 = arith.constant 0 : index
    %74 = vector.load %arg16[%c0_54, %c0_55, %c0_56] : memref<1x1x10xf32, #tpu.memory_space<vmem>>, vector<1x1x10xf32>
    %75 = vector.shape_cast %74 : vector<1x1x10xf32> to vector<1x10xf32>
    %76 = vector.shape_cast %73 : vector<1x10xf32> to vector<1x1x10xf32>
    tpu.vector_store %arg16[%c0_54, %c0_55, %c0_56], %76 {strides = array<i32>} : memref<1x1x10xf32, #tpu.memory_space<vmem>>, vector<1x1x10xf32>,
    return
  }
  func.func @transform_0(%arg0: i32) -> (i32, i32, i32, i32) {
    %c0_i32 = arith.constant 0 : i32
    %c0_i32_0 = arith.constant 0 : i32
    %c0_i32_1 = arith.constant 0 : i32
    %c0_i32_2 = arith.constant 0 : i32
    return %arg0, %c0_i32, %c0_i32_0, %c0_i32_1 : i32, i32, i32, i32
  }
  func.func @transform_1(%arg0: i32) -> (i32, i32) {
    %c0_i32 = arith.constant 0 : i32
    %c0_i32_0 = arith.constant 0 : i32
    %c0_i32_1 = arith.constant 0 : i32
    return %c0_i32, %c0_i32_0 : i32, i32
  }
  func.func @transform_2(%arg0: i32) -> (i32, i32) {
    %c0_i32 = arith.constant 0 : i32
    %c0_i32_0 = arith.constant 0 : i32
    %c0_i32_1 = arith.constant 0 : i32
    return %c0_i32, %c0_i32_0 : i32, i32
  }
  func.func @transform_3(%arg0: i32) -> (i32, i32) {
    %c0_i32 = arith.constant 0 : i32
    %c0_i32_0 = arith.constant 0 : i32
    %c0_i32_1 = arith.constant 0 : i32
    return %c0_i32, %c0_i32_0 : i32, i32
  }
  func.func @transform_4(%arg0: i32) -> (i32, i32) {
    %c0_i32 = arith.constant 0 : i32
    %c0_i32_0 = arith.constant 0 : i32
    %c0_i32_1 = arith.constant 0 : i32
    return %c0_i32, %c0_i32_0 : i32, i32
  }
  func.func @transform_5(%arg0: i32) -> (i32, i32) {
    %c0_i32 = arith.constant 0 : i32
    %c0_i32_0 = arith.constant 0 : i32
    %c0_i32_1 = arith.constant 0 : i32
    return %c0_i32, %c0_i32_0 : i32, i32
  }
  func.func @transform_6(%arg0: i32) -> (i32, i32) {
    %c0_i32 = arith.constant 0 : i32
    %c0_i32_0 = arith.constant 0 : i32
    %c0_i32_1 = arith.constant 0 : i32
    return %c0_i32, %c0_i32_0 : i32, i32
  }
  func.func @transform_7(%arg0: i32) -> (i32, i32) {
    %c0_i32 = arith.constant 0 : i32
    %c0_i32_0 = arith.constant 0 : i32
    %c0_i32_1 = arith.constant 0 : i32
    return %c0_i32, %c0_i32_0 : i32, i32
  }
  func.func @transform_8(%arg0: i32) -> (i32, i32) {
    %c0_i32 = arith.constant 0 : i32
    %c0_i32_0 = arith.constant 0 : i32
    %c0_i32_1 = arith.constant 0 : i32
    return %c0_i32, %c0_i32_0 : i32, i32
  }
  func.func @transform_9(%arg0: i32) -> (i32, i32) {
    %c0_i32 = arith.constant 0 : i32
    %c0_i32_0 = arith.constant 0 : i32
    %c0_i32_1 = arith.constant 0 : i32
    return %c0_i32, %c0_i32_0 : i32, i32
  }
  func.func @transform_10(%arg0: i32) -> (i32, i32) {
    %c0_i32 = arith.constant 0 : i32
    %c0_i32_0 = arith.constant 0 : i32
    %c0_i32_1 = arith.constant 0 : i32
    return %c0_i32, %c0_i32_0 : i32, i32
  }
  func.func @transform_11(%arg0: i32) -> (i32, i32) {
    %c0_i32 = arith.constant 0 : i32
    %c0_i32_0 = arith.constant 0 : i32
    %c0_i32_1 = arith.constant 0 : i32
    return %c0_i32, %c0_i32_0 : i32, i32
  }
  func.func @transform_12(%arg0: i32) -> (i32, i32) {
    %c0_i32 = arith.constant 0 : i32
    %c0_i32_0 = arith.constant 0 : i32
    %c0_i32_1 = arith.constant 0 : i32
    return %c0_i32, %c0_i32_0 : i32, i32
  }
  func.func @transform_13(%arg0: i32) -> (i32, i32) {
    %c0_i32 = arith.constant 0 : i32
    %c0_i32_0 = arith.constant 0 : i32
    %c0_i32_1 = arith.constant 0 : i32
    return %c0_i32, %c0_i32_0 : i32, i32
  }
  func.func @transform_14(%arg0: i32) -> (i32, i32) {
    %c0_i32 = arith.constant 0 : i32
    %c0_i32_0 = arith.constant 0 : i32
    %c0_i32_1 = arith.constant 0 : i32
    return %c0_i32, %c0_i32_0 : i32, i32
  }
  func.func @transform_15(%arg0: i32) -> (i32, i32, i32) {
    %c0_i32 = arith.constant 0 : i32
    %c0_i32_0 = arith.constant 0 : i32
    %c0_i32_1 = arith.constant 0 : i32
    return %arg0, %c0_i32, %c0_i32_0 : i32, i32, i32
  }
}

</mosaic_0001>

<bundles_post_ra>
// kernel: lenet_forward.1
= control target key start
LH: loop header
LB: loop body
LE: loop exit
PB: predicated region body
PF: predicated region fallthrough
CT: control target
= control target key end

     0   :  { %20 = vsyncpa [#allocation4], 0  ;;  %s3669_s0 = inlined_call_operand.vmem [shape: f32[2,1,28,28], index: 0, kind: input, shape index: {}]   ;;  %s3670_s1 = inlined_call_operand.vmem [shape: bf16[140,168], index: 1, kind: input, shape index: {}]   ;;  %s3671_s2 = inlined_call_operand.vmem [shape: f32[1,168], index: 2, kind: input, shape index: {}]   ;;  %s3672_s3 = inlined_call_operand.vmem [shape: bf16[14,28], index: 3, kind: input, shape index: {}]   ;;  %s3673_s4 = inlined_call_operand.vmem [shape: bf16[168,84], index: 4, kind: input, shape index: {}]   ;;  %s3674_s5 = inlined_call_operand.vmem [shape: bf16[420,160], index: 5, kind: input, shape index: {}]   ;;  %s3675_s6 = inlined_call_operand.vmem [shape: f32[1,160], index: 6, kind: input, shape index: {}]   ;;  %s3676_s7 = inlined_call_operand.vmem [shape: bf16[5,10], index: 7, kind: input, shape index: {}]   ;;  %s3677_s8 = inlined_call_operand.vmem [shape: bf16[160,80], index: 8, kind: input, shape index: {}]   ;;  %s3678_s9 = inlined_call_operand.vmem [shape: bf16[400,120], index: 9, kind: input, shape index: {}]   ;;  %s3679_s10 = inlined_call_operand.vmem [shape: f32[1,120], index: 10, kind: input, shape index: {}]   ;;  %s3680_s11 = inlined_call_operand.vmem [shape: bf16[120,84], index: 11, kind: input, shape index: {}]   ;;  %s3681_s12 = inlined_call_operand.vmem [shape: f32[1,84], index: 12, kind: input, shape index: {}]   ;;  %s3682_s13 = inlined_call_operand.vmem [shape: bf16[84,10], index: 13, kind: input, shape index: {}]   ;;  %s3683_s14 = inlined_call_operand.vmem [shape: f32[1,10], index: 14, kind: input, shape index: {}]   ;;  %s3684_s15 = inlined_call_operand.hbm [shape: f32[2,1,10], index: 15, kind: output, shape index: {}]  }
   0x1   :  { %22 = vsyncpa [#allocation4 + $0x1], 0  ;;  %s3023_s18 = smov 0   ;;  %s3025_s19 = smov 0  }
   0x2   :  { %s3027_s20 = smov 0   ;;  %s3029_s21 = smov 0  }
   0x3 LB: > { %3691 = sst [smem:[#allocation6_spill]] %s2916_s18  ;;  %s3044_s22 = sadd.s32 4294967295, %s2928_s21   ;;  %s2928_s21 = sphi %s3029_s21, %s3702_s21   ;;  %s2924_s20 = sphi %s3027_s20, %s3704_s20   ;;  %s2920_s19 = sphi %s3025_s19, %s3706_s19   ;;  %s2916_s18 = sphi %s3023_s18, %s3705_s18  }
   0x4   : > { %3692 = sst [smem:[#allocation7_spill]] %s2924_s20  ;;  %s2300_s23 = sadd.s32 4294967294, %s2928_s21  }
   0x5   : > { %3693 = sst [smem:[#allocation8_spill]] %s2928_s21  ;;  %s3048_s24 = sadd.s32 1, %s2928_s21  }
   0x6   : > { %3694 = sst [smem:[#allocation9_spill]] %s3048_s24  ;;  %s355_s25 = sadd.s32 1, %s2924_s20 }
   0x7   : > { %s352_s26 = ssub.s32 %s2928_s21, %s3048_s24  ;;  %p365_p0 = scmp.ne.s32.totalorder %s2924_s20, %s2920_s19 }
   0x8   : > { %p353_p1 = scmp.eq.s32.totalorder %s352_s26, 0  ;;  %p366_p2 = scmp.eq.s32.totalorder %s3044_s22, 1 }
   0x9   : > { %p371_p3 = scmp.ne.s32.totalorder %s2920_s19, %s2916_s18  ;;  %p372_p4 = scmp.eq.s32.totalorder %s2300_s23, 1 }
   0xa   : > { %s3059_s27 = scalar_select %p353_p1, %s2924_s20, %s355_s25  }
   0xb   : > { %p3061_p5 = por %p366_p2, %p365_p0  ;;  %p3065_p6 = por %p372_p4, %p371_p3 }
   0xc   : > { %3695 = sst [smem:[#allocation10_spill]] %s3059_s27  ;;  %p2303_p7 = scmp.ge.s32.totalorder %s2928_s21, 1 }
   0xd   : > { %s3697_s29 = scalar_select %p3065_p6, 1, 0 }
   0xe   : > { %p440_p8 = scmp.lt.s32.totalorder %s2928_s21, 3 }
   0xf   : > { %3698 = sst [smem:[#allocation11_spill]] %s3697_s29 }
  0x10   : > { %p441_p9 = pnand %p2303_p7, %p440_p8 }
  0x11   : > { %p487_p10 = scmp.lt.s32.totalorder (!%p441_p9), %s3044_s22, 1  ;;  %vm493_vm0 = vcmask (!%p441_p9), 228352   ;;  %v2930_v0 = vmov (!%p441_p9), 0.0   ;;  %v2650_v1 = vld [vmem:[%s3670_s1 + $0x4] ss:$8 sps:$4 sm:$0xff] (!%p441_p9)   ;;  %vm505_vm1 = vcmask (!%p441_p9), 224256  }
  0x12   : > { %444 = sbr.rel (%p441_p9) target bundleno = 2531 (0x9e3), region = 80  ;;  %494 = vst.msk [vmem:[#allocation2] sm:$0xff] (!%p441_p9), %vm493_vm0, %v2930_v0  ;;  %495 = vst.msk [vmem:[#allocation2 + $0x8] sm:$0xff] (!%p441_p9), %vm493_vm0, %v2930_v0  ;;  %v2652_v2 = vld [vmem:[%s3670_s1] ss:$8 sps:$4 sm:$0xff] (!%p441_p9)   ;;  %746 = vmatprep.subr.bf16.mxu0 (!%p441_p9), %v2650_v1  ;;  %s2931_s16 = smov (!%p441_p9), 28  }
  0x13   : > { %496 = vst.msk [vmem:[#allocation2 + $0x10] sm:$0xff] (!%p441_p9), %vm493_vm0, %v2930_v0  ;;  %497 = vst.msk [vmem:[#allocation2 + $0x18] sm:$0xff] (!%p441_p9), %vm493_vm0, %v2930_v0  ;;  %v2653_v3 = vld [vmem:[%s3670_s1 + $0x14] ss:$8 sps:$4 sm:$0xff] (!%p441_p9)   ;;  %747 = vmatpush1.bf16.msra.mxu0 (!%p441_p9), %v2652_v2  ;;  %v2655_v4 = vld [vmem:[%s3670_s1 + $0x10] ss:$8 sps:$4 sm:$0xff] (!%p441_p9)  }
  0x14   : > { %748 = vmatprep.subr.bf16.mxu0 (!%p441_p9), %v2653_v3  ;;  %v2656_v5 = vld [vmem:[%s3670_s1 + $0x24] ss:$8 sps:$4 sm:$0xff] (!%p441_p9)   ;;  %v2658_v10 = vld [vmem:[%s3670_s1 + $0x20] ss:$8 sps:$4 sm:$0xff] (!%p441_p9)   ;;  %v2659_v11 = vld [vmem:[%s3670_s1 + $0x34] ss:$8 sps:$4 sm:$0xff] (!%p441_p9)  }
  0x15   : > { %v2661_v12 = vld [vmem:[%s3670_s1 + $0x30] ss:$8 sps:$4 sm:$0xff] (!%p441_p9)   ;;  %v2662_v13 = vld [vmem:[%s3670_s1 + $0x44] ss:$8 sps:$4 sm:$0xff] (!%p441_p9)   ;;  %v2664_v24 = vld [vmem:[%s3670_s1 + $0x40] ss:$8 sps:$4 sm:$0xff] (!%p441_p9)  }
  0x16   : > { %v2665_v26 = vld [vmem:[%s3670_s1 + $0x54] ss:$8 sps:$4 sm:$0xff] (!%p441_p9)   ;;  %v2667_v32 = vld [vmem:[%s3670_s1 + $0x50] ss:$8 sps:$4 sm:$0xff] (!%p441_p9)   ;;  %v2668_v35 = vld [vmem:[%s3670_s1 + $0x64] ss:$8 sps:$4 sm:$0xff] (!%p441_p9)  }
  0x17   : > { %749 = vmatpush1.bf16.msra.mxu0 (!%p441_p9), %v2655_v4  ;;  %s2934_s25 = smov (!%p441_p9), 112   ;;  %v2670_v39 = vld [vmem:[%s3670_s1 + $0x60] ss:$8 sps:$4 sm:$0xff] (!%p441_p9)   ;;  %v2671_v41 = vld [vmem:[%s3670_s1 + $0x74] ss:$8 sps:$4 sm:$0xff] (!%p441_p9)   ;;  %vm739_vm2 = vcmask (!%p441_p9), 1045504  }
  0x18   : > { %750 = vmatprep.subr.bf16.mxu0 (!%p441_p9), %v2656_v5  ;;  %v2673_v44 = vld [vmem:[%s3670_s1 + $0x70] ss:$8 sps:$4 sm:$0xff] (!%p441_p9)   ;;  %v2674_v45 = vld [vmem:[%s3670_s1 + $0x84] ss:$8 sps:$4 sm:$0x3f] (!%p441_p9)   ;;  %vm595_vm3 = vcmask (!%p441_p9), 457728  }
  0x19   : > { %s488_s17 = scalar_select %p487_p10, %s3044_s22, 1  ;;  %v2676_v46 = vld [vmem:[%s3670_s1 + $0x80] ss:$8 sps:$4 sm:$0x3f]   ;;  %vm600_vm4 = vcmask 687104   ;;  %vm605_vm5 = vcmask 916480  }
  0x1a   : > { %v741_v47 = vsel %vm739_vm2, %v2676_v46, 0  ;;  %vm732_vm6 = vcmask 97280   ;;  %vm992_vm7 = vcmask 1043456   ;;  %vm988_vm8 = vcmask 326656   ;;  %s2936_s23 = smov 40   ;;  %s2937_s18 = smov 80  }
  0x1b   : > { %s2456_s20 = sshll.u32 %s488_s17, 5  ;;  %751 = vmatpush1.bf16.msra.mxu0 %v2658_v10  ;;  %s2933_s17 = smov 56   ;;  %vm1039_vm9 = vcmask 1046528   ;;  %vm1058_vm10 = vcmask 1044480   ;;  %vm1081_vm11 = vcmask 1014784   ;;  %vm1421_vm12 = vcmask 293888  }
  0x1c   : > { %s491_s30 = scalar_lea.vmem %s3669_s0, %s2456_s20  ;;  %752 = vmatprep.subr.bf16.mxu0 %v2659_v11  ;;  %s2932_s20 = smov 84   ;;  %vm1425_vm13 = vcmask 1041408   ;;  %vm1084_vm14 = vcmask 654336   ;;  %vm1541_vm15 = vcmask 80896  }
  0x1d   : > { %v498_v6 = vld [vmem:[%s491_s30] sm:$0xff]  ;;  %v499_v7 = vld [vmem:[%s491_s30 + $0x8] sm:$0xff]  ;;  %v500_v8 = vld [vmem:[%s491_s30 + $0x10] sm:$0xff]  ;;  %s2938_s21 = smov 124   ;;  %s2453_s24 = sshll.u32 %s3044_s22, 4 }
  0x1e   : > { %502 = vst.msk [vmem:[#allocation2 + $0x2] sm:$0xff] %vm493_vm0, %v498_v6  ;;  %503 = vst.msk [vmem:[#allocation2 + $0xa] sm:$0xff] %vm493_vm0, %v499_v7  ;;  %v501_v9 = vld [vmem:[%s491_s30 + $0x18] sm:$0xf] }
  0x1f   : > { %504 = vst.msk [vmem:[#allocation2 + $0x12] sm:$0xff] %vm493_vm0, %v500_v8  ;;  %753 = vmatpush1.bf16.msra.mxu0 %v2661_v12 }
  0x20   : > { %506 = vst.msk [vmem:[#allocation2 + $0x1a] sm:$0xf] %vm505_vm1, %v501_v9  ;;  %754 = vmatprep.subr.bf16.mxu0 %v2662_v13  ;;  %vm1945_vm1 = vcmask 130048  }
  0x23   : > { %755 = vmatpush1.bf16.msra.mxu0 %v2664_v24 }
  0x24   : > { %756 = vmatprep.subr.bf16.mxu0 %v2665_v26 }
  0x25   : > { %v511_v14 = vld [vmem:[#allocation2 + $0x1] sm:$0xff]  ;;  %v512_v15 = vld [vmem:[#allocation2 + $0x9] sm:$0xff] }
  0x26   : > { %v519_v16 = vld [vmem:[#allocation2 + $0x3] sm:$0xff]  ;;  %v2590_v17 = vpack.i.bf16 %v512_v15, %v511_v14  ;;  %v520_v18 = vld [vmem:[#allocation2 + $0xb] sm:$0xff] }
  0x27   : > { %v515_v19 = vld [vmem:[#allocation2 + $0x2] sm:$0xff]  ;;  %v516_v20 = vld [vmem:[#allocation2 + $0xa] sm:$0xff]  ;;  %v2600_v21 = vpack.i.bf16 %v520_v18, %v519_v16  ;;  %v514_v29 = vld [vmem:[#allocation2 + $0x19] sm:$0xf]  ;;  %757 = vmatpush1.bf16.msra.mxu0 %v2667_v32 }
  0x28   : > { %v523_v22 = vld [vmem:[#allocation2 + $0x4] sm:$0xff]  ;;  %v524_v23 = vld [vmem:[#allocation2 + $0xc] sm:$0xff]  ;;  %2591 = vrot.lane.b32.xlu0 %v2590_v17, %s2931_s16  ;;  %v2595_v25 = vpack.i.bf16 %v516_v20, %v515_v19  ;;  %v518_v31 = vld [vmem:[#allocation2 + $0x1a] sm:$0xf]  ;;  %758 = vmatprep.subr.bf16.mxu0 %v2668_v35 }
  0x29   : > { %2601 = vrot.lane.b32.xlu1 %v2600_v21, %s2932_s20  ;;  %v2605_v27 = vpack.i.bf16 %v524_v23, %v523_v22  ;;  %v513_v28 = vld [vmem:[#allocation2 + $0x11] sm:$0xff]  ;;  %v522_v34 = vld [vmem:[#allocation2 + $0x1b] sm:$0xf]  ;;  %v507_v52 = vld [vmem:[#allocation2] sm:$0xff] }
  0x2a   : > { %v517_v30 = vld [vmem:[#allocation2 + $0x12] sm:$0xff]  ;;  %v2610_v36 = vpack.i.bf16 %v514_v29, %v513_v28  ;;  %v526_v40 = vld [vmem:[#allocation2 + $0x1c] sm:$0xf]  ;;  %v508_v53 = vld [vmem:[#allocation2 + $0x8] sm:$0xff] }
  0x2b   : > { %v521_v33 = vld [vmem:[#allocation2 + $0x13] sm:$0xff]  ;;  %v2615_v38 = vpack.i.bf16 %v518_v31, %v517_v30  ;;  %759 = vmatpush1.bf16.msra.mxu0 %v2670_v39 }
  0x2c   : > { %2596 = vrot.lane.b32.xlu0 %v2595_v25, %s2933_s17  ;;  %v525_v37 = vld [vmem:[#allocation2 + $0x14] sm:$0xff]  ;;  %v2620_v42 = vpack.i.bf16 %v522_v34, %v521_v33  ;;  %760 = vmatprep.subr.bf16.mxu0 %v2671_v41  ;;  %v2935_v33 = vmov 0   ;;  %v634_v34 = vlaneseq }
  0x2d   : > { %2606 = vrot.lane.b32.xlu1 %v2605_v27, %s2934_s25  ;;  %v2625_v43 = vpack.i.bf16 %v526_v40, %v525_v37  ;;  %v509_v3 = vld [vmem:[#allocation2 + $0x10] sm:$0xff]  ;;  %v510_v4 = vld [vmem:[#allocation2 + $0x18] sm:$0xf]  ;;  %891 = vmatprep.mubr.bf16.mxu1 %v2935_v33  ;;  %v632_v37 = vld [vmem:[%s3671_s2] sm:$0x3] }
  0x2e   : > { %v3166_v35 = vshrl.u32 %v634_v34, 7 }
  0x2f   : > { %761 = vmatpush1.bf16.msra.mxu0 %v2673_v44 }
  0x30   : > { %2611 = vrot.lane.b32.xlu0 %v2610_v36, %s2931_s16  ;;  %2324 = vmatprep.subr.msk.bf16.mxu0 %vm739_vm2, %v2674_v45  ;;  %v636_v36 = vsub.s32 0, %v3166_v35  ;;  %s2939_s16 = smov 32  }
  0x31   : > { %2616 = vrot.lane.b32.xlu1 %v2615_v38, %s2933_s17  ;;  %v640_v38 = vsub.s32 1, %v3166_v35  ;;  %s2940_s17 = smov 64  }
  0x32   : > { %v637_v39 = vrot.slane %v632_v37, %v636_v36 }
  0x33   : > { %763 = vmatpush1.bf16.msra.mxu0 %v741_v47  ;;  %v641_v40 = vrot.slane %v632_v37, %v640_v38 }
  0x34   : > { %2621 = vrot.lane.b32.xlu0 %v2620_v42, %s2932_s20 }
  0x35   : > { %2626 = vrot.lane.b32.xlu1 %v2625_v43, %s2934_s25 }
  0x9a   : > { %v2592_v48 = vpop.permute.xlu0 %2591 }
  0x9b   : > { %v2602_v49 = vpop.permute.xlu1 %2601  ;;  %v2594_v50 = vunpack.i.h.bf16 %v2592_v48  ;;  %v2593_v51 = vunpack.i.l.bf16 %v2592_v48 }
  0x9c   : > { %v2604_v55 = vunpack.i.h.bf16 %v2602_v49  ;;  %v2603_v56 = vunpack.i.l.bf16 %v2602_v49 }
  0x9d   : > { %v591_v60 = vsel %vm493_vm0, %v507_v52, %v2593_v51  ;;  %v592_v61 = vsel %vm493_vm0, %v508_v53, %v2594_v50 }
  0x9e   : > { %v2597_v54 = vpop.permute.xlu0 %2596 }
  0x9f   : > { %v2599_v57 = vunpack.i.h.bf16 %v2597_v54  ;;  %v2598_v58 = vunpack.i.l.bf16 %v2597_v54  ;;  %v2607_v59 = vpop.permute.xlu1 %2606 }
  0xa0   : > { %v2609_v62 = vunpack.i.h.bf16 %v2607_v59  ;;  %v2608_v63 = vunpack.i.l.bf16 %v2607_v59 }
  0xa1   : > { %v596_v1 = vsel %vm595_vm3, %v591_v60, %v2598_v58  ;;  %v597_v2 = vsel %vm595_vm3, %v592_v61, %v2599_v57 }
  0xa2   : > { %v2612_v5 = vpop.permute.xlu0 %2611  ;;  %v629_v6 = vpack.c.bf16 %v2609_v62, %v2608_v63  ;;  %v601_v7 = vsel %vm600_vm4, %v596_v1, %v2603_v56  ;;  %v602_v8 = vsel %vm600_vm4, %v597_v2, %v2604_v55 }
  0xa3   : > { %v2614_v9 = vunpack.i.h.bf16 %v2612_v5  ;;  %v2613_v10 = vunpack.i.l.bf16 %v2612_v5  ;;  %v2617_v11 = vpop.permute.xlu1 %2616  ;;  %v606_v12 = vsel %vm605_vm5, %v601_v7, %v2608_v63  ;;  %v607_v13 = vsel %vm605_vm5, %v602_v8, %v2609_v62 }
  0xa4   : > { %v2619_v14 = vunpack.i.h.bf16 %v2617_v11  ;;  %v2618_v15 = vunpack.i.l.bf16 %v2617_v11  ;;  %2325 = vmatprep.mubr.msk.bf16.mxu0 %vm732_vm6, %v629_v6  ;;  %v628_v16 = vpack.c.bf16 %v607_v13, %v606_v12 }
  0xa5   : > { %v594_v17 = vsel %vm493_vm0, %v510_v4, %v2614_v9  ;;  %v593_v18 = vsel %vm493_vm0, %v509_v3, %v2613_v10 }
  0xa6   : > { %v598_v19 = vsel %vm595_vm3, %v593_v18, %v2618_v15  ;;  %v599_v20 = vsel %vm595_vm3, %v594_v17, %v2619_v14  ;;  %v2622_v21 = vpop.permute.xlu0 %2621  ;;  %779 = vmatmul.mubr.bf16.vlgmr.msra.gmra.mrb[0].mxu0 %v628_v16  ;;  %vm2941_vm3 = vmmov 0  }
  0xa7   : > { %v2624_v22 = vunpack.i.h.bf16 %v2622_v21  ;;  %v2623_v23 = vunpack.i.l.bf16 %v2622_v21  ;;  %v2627_v24 = vpop.permute.xlu1 %2626 }
  0xa8   : > { %v2629_v25 = vunpack.i.h.bf16 %v2627_v24  ;;  %v2628_v26 = vunpack.i.l.bf16 %v2627_v24 }
  0xa9   : > { %v603_v27 = vsel %vm600_vm4, %v598_v19, %v2623_v23  ;;  %v604_v28 = vsel %vm600_vm4, %v599_v20, %v2624_v22 }
  0xaa   : > { %v631_v29 = vpack.c.bf16 %v2629_v25, %v2628_v26  ;;  %v608_v30 = vsel %vm605_vm5, %v603_v27, %v2628_v26  ;;  %v609_v31 = vsel %vm605_vm5, %v604_v28, %v2629_v25 }
  0xab   : > { %v630_v32 = vpack.c.bf16 %v609_v31, %v608_v30 }
  0xac   : > { %2326 = vmatprep.mubr.msk.bf16.mxu0 %vm732_vm6, %v631_v29  ;;  %vm2230_vm6 = vcmask 73728  }
  0xae   : > { %789 = vmatmul.mubr.bf16.gmra.mrb[4].mxu0 %v630_v32 }
 0x179   : > { %v780_v41 = vpop.f32.mrb[0].mxu0 }
 0x17a   : > { %v781_v42 = vadd.f32 %v780_v41, %v637_v39  ;;  %v782_v43 = vpop.f32.mrb[1].mxu0 }
 0x17b   : > { %v783_v44 = vadd.f32 %v782_v43, %v641_v40  ;;  %v784_v45 = vpop.f32.mrb[2].mxu0  ;;  %v2677_v43 = vld [vmem:[%s3672_s3] sm:$0x7f]  }
 0x17c   : > { %v799_v46 = vsub.f32 0.0, %v781_v42  ;;  %v785_v47 = vadd.f32 %v784_v45, %v637_v39  ;;  %v786_v48 = vpop.f32.mrb[3].mxu0  ;;  %v2679_v45 = vld [vmem:[%s3673_s4 + $0x8] sm:$0xff]  }
 0x17d   : > { %v800_v49 = vsub.f32 0.0, %v783_v44  ;;  %v787_v50 = vadd.f32 %v786_v48, %v641_v40  ;;  %v2678_v44 = vld [vmem:[%s3673_s4] sm:$0xff]  }
 0x17e   : > { %v807_v51 = vmul.f32 1.442695, %v799_v46  ;;  %v801_v52 = vsub.f32 0.0, %v785_v47  ;;  %v2680_v46 = vld [vmem:[%s3673_s4 + $0x10] sm:$0xff]   ;;  %v2681_v47 = vld [vmem:[%s3673_s4 + $0x18] sm:$0xff]   ;;  %v2682_v48 = vld [vmem:[%s3673_s4 + $0x20] sm:$0xff]  }
 0x17f   : > { %v809_v53 = vmul.f32 1.442695, %v800_v49  ;;  %v802_v54 = vsub.f32 0.0, %v787_v50  ;;  %v2683_v49 = vld [vmem:[%s3673_s4 + $0x28] sm:$0xff]   ;;  %v2684_v50 = vld [vmem:[%s3673_s4 + $0x30] sm:$0xff]  }
 0x180   : > { %2818 = vpow2.f32 %v807_v51  ;;  %v811_v55 = vmul.f32 1.442695, %v801_v52  ;;  %v2685_v51 = vld [vmem:[%s3673_s4 + $0x38] sm:$0xff]   ;;  %v2686_v52 = vld [vmem:[%s3673_s4 + $0x40] sm:$0xff]  }
 0x181   : > { %2820 = vpow2.f32 %v809_v53  ;;  %v813_v56 = vmul.f32 1.442695, %v802_v54  ;;  %v790_v57 = vpop.f32.mrb[4].mxu0  ;;  %v2687_v53 = vld [vmem:[%s3673_s4 + $0x48] sm:$0xff]   ;;  %v2688_v54 = vld [vmem:[%s3673_s4 + $0x50] ss:$0 sps:$4 sm:$0xff]  }
 0x182   : > { %2822 = vpow2.f32 %v811_v55  ;;  %v791_v58 = vadd.f32 %v790_v57, %v637_v39  ;;  %v792_v59 = vpop.f32.mrb[5].mxu0  ;;  %v994_v55 = vsel %vm992_vm7, %v2688_v54, 0 }
 0x183   : > { %2824 = vpow2.f32 %v813_v56  ;;  %v793_v60 = vadd.f32 %v792_v59, %v641_v40  ;;  %v794_v61 = vpop.f32.mrb[6].mxu0 }
 0x184   : > { %v803_v62 = vsub.f32 0.0, %v791_v58  ;;  %v795_v63 = vadd.f32 %v794_v61, %v637_v39  ;;  %v796_v1 = vpop.f32.mrb[7].mxu0 }
 0x185   : > { %v804_v2 = vsub.f32 0.0, %v793_v60  ;;  %v797_v3 = vadd.f32 %v796_v1, %v641_v40  ;;  %v2694_v1 = vld [vmem:[%s3674_s5 + $0x14] ss:$8 sps:$4 sm:$0xff]  }
 0x186   : > { %v815_v4 = vmul.f32 1.442695, %v803_v62  ;;  %v805_v5 = vsub.f32 0.0, %v795_v63  ;;  %v2689_v62 = vld [vmem:[%s3674_s5] ss:$8 sps:$4 sm:$0xff]  }
 0x187   : > { %v817_v6 = vmul.f32 1.442695, %v804_v2  ;;  %v806_v7 = vsub.f32 0.0, %v797_v3  ;;  %v2691_v63 = vld [vmem:[%s3674_s5 + $0x4] ss:$8 sps:$4 sm:$0xff]  }
 0x188   : > { %2826 = vpow2.f32 %v815_v4  ;;  %v819_v8 = vmul.f32 1.442695, %v805_v5  ;;  %1432 = vmatprep.subr.bf16.mxu0 %v2691_v63  ;;  %v2692_v2 = vld [vmem:[%s3674_s5 + $0x10] ss:$8 sps:$4 sm:$0xff]   ;;  %v2697_v3 = vld [vmem:[%s3674_s5 + $0x24] ss:$8 sps:$4 sm:$0xff]  }
 0x189   : > { %2828 = vpow2.f32 %v817_v6  ;;  %v821_v9 = vmul.f32 1.442695, %v806_v7  ;;  %1433 = vmatpush1.bf16.msra.mxu0 %v2689_v62  ;;  %v2695_v4 = vld [vmem:[%s3674_s5 + $0x20] ss:$8 sps:$4 sm:$0xff]   ;;  %v2700_v5 = vld [vmem:[%s3674_s5 + $0x34] ss:$8 sps:$4 sm:$0xff]  }
 0x18a   : > { %v2819_v10 = vpop.eup %2818  ;;  %2830 = vpow2.f32 %v819_v8  ;;  %1434 = vmatprep.subr.bf16.mxu0 %v2694_v1  ;;  %v2698_v6 = vld [vmem:[%s3674_s5 + $0x30] ss:$8 sps:$4 sm:$0xff]   ;;  %v2703_v7 = vld [vmem:[%s3674_s5 + $0x44] ss:$8 sps:$4 sm:$0xff]   ;;  %v2701_v8 = vld [vmem:[%s3674_s5 + $0x40] ss:$8 sps:$4 sm:$0xff]  }
 0x18b   : > { %v2821_v11 = vpop.eup %2820  ;;  %v823_v12 = vadd.f32 1.0, %v2819_v10  ;;  %2832 = vpow2.f32 %v821_v9  ;;  %v2706_v9 = vld [vmem:[%s3674_s5 + $0x54] ss:$8 sps:$4 sm:$0xff]   ;;  %v2704_v10 = vld [vmem:[%s3674_s5 + $0x50] ss:$8 sps:$4 sm:$0xff]  }
 0x18c   : > { %v2823_v13 = vpop.eup %2822  ;;  %v824_v14 = vadd.f32 1.0, %v2821_v11  ;;  %v2709_v11 = vld [vmem:[%s3674_s5 + $0x64] ss:$8 sps:$4 sm:$0xff]  }
 0x18d   : > { %v2825_v15 = vpop.eup %2824  ;;  %2834 = vrcp.f32 %v823_v12  ;;  %v825_v16 = vadd.f32 1.0, %v2823_v13  ;;  %1435 = vmatpush1.bf16.msra.mxu0 %v2692_v2  ;;  %v2707_v12 = vld [vmem:[%s3674_s5 + $0x60] ss:$8 sps:$4 sm:$0xff]   ;;  %v2712_v13 = vld [vmem:[%s3674_s5 + $0x74] ss:$8 sps:$4 sm:$0xff]  }
 0x18e   : > { %2836 = vrcp.f32 %v824_v14  ;;  %v826_v17 = vadd.f32 1.0, %v2825_v15  ;;  %1436 = vmatprep.subr.bf16.mxu0 %v2697_v3  ;;  %v2710_v14 = vld [vmem:[%s3674_s5 + $0x70] ss:$8 sps:$4 sm:$0xff]   ;;  %v2715_v15 = vld [vmem:[%s3674_s5 + $0x84] ss:$8 sps:$4 sm:$0xff]  }
 0x18f   : > { %2838 = vrcp.f32 %v825_v16  ;;  %v2713_v16 = vld [vmem:[%s3674_s5 + $0x80] ss:$8 sps:$4 sm:$0xff]  }
 0x190   : > { %2840 = vrcp.f32 %v826_v17  ;;  %v2718_v17 = vld [vmem:[%s3674_s5 + $0x94] ss:$8 sps:$4 sm:$0xff]  }
 0x191   : > { %1437 = vmatpush1.bf16.msra.mxu0 %v2695_v4 }
 0x192   : > { %v2827_v18 = vpop.eup %2826  ;;  %1438 = vmatprep.subr.bf16.mxu0 %v2700_v5 }
 0x193   : > { %v2829_v19 = vpop.eup %2828  ;;  %v827_v20 = vadd.f32 1.0, %v2827_v18  ;;  %v2716_v18 = vld [vmem:[%s3674_s5 + $0x90] ss:$8 sps:$4 sm:$0xff]  }
 0x194   : > { %v2831_v21 = vpop.eup %2830  ;;  %v828_v22 = vadd.f32 1.0, %v2829_v19  ;;  %v2721_v19 = vld [vmem:[%s3674_s5 + $0xa4] ss:$8 sps:$4 sm:$0xff]  }
 0x195   : > { %v2833_v23 = vpop.eup %2832  ;;  %2842 = vrcp.f32 %v827_v20  ;;  %v829_v24 = vadd.f32 1.0, %v2831_v21  ;;  %1439 = vmatpush1.bf16.msra.mxu0 %v2698_v6  ;;  %v2719_v20 = vld [vmem:[%s3674_s5 + $0xa0] ss:$8 sps:$4 sm:$0xff]   ;;  %v2724_v21 = vld [vmem:[%s3674_s5 + $0xb4] ss:$8 sps:$4 sm:$0xff]  }
 0x196   : > { %2844 = vrcp.f32 %v828_v22  ;;  %v830_v25 = vadd.f32 1.0, %v2833_v23  ;;  %1440 = vmatprep.subr.bf16.mxu0 %v2703_v7  ;;  %v2722_v22 = vld [vmem:[%s3674_s5 + $0xb0] ss:$8 sps:$4 sm:$0xff]   ;;  %v2727_v23 = vld [vmem:[%s3674_s5 + $0xc4] ss:$8 sps:$4 sm:$0xff]  }
 0x197   : > { %v2835_v26 = vpop.eup %2834  ;;  %2846 = vrcp.f32 %v829_v24  ;;  %v2725_v24 = vld [vmem:[%s3674_s5 + $0xc0] ss:$8 sps:$4 sm:$0xff]  }
 0x198   : > { %v2837_v27 = vpop.eup %2836  ;;  %2848 = vrcp.f32 %v830_v25  ;;  %v2730_v25 = vld [vmem:[%s3674_s5 + $0xd4] ss:$8 sps:$4 sm:$0xff]  }
 0x199   : > { %v2839_v28 = vpop.eup %2838  ;;  %1441 = vmatpush1.bf16.msra.mxu0 %v2701_v8 }
 0x19a   : > { %v2841_v29 = vpop.eup %2840  ;;  %v841_v30 = vpack.c.bf16 %v2839_v28, %v2835_v26  ;;  %1442 = vmatprep.subr.bf16.mxu0 %v2706_v9  ;;  %v2728_v26 = vld [vmem:[%s3674_s5 + $0xd0] ss:$8 sps:$4 sm:$0xff]   ;;  %v2731_v28 = vld [vmem:[%s3674_s5 + $0xe0] ss:$8 sps:$4 sm:$0xff]  }
 0x19b   : > { %v842_v31 = vpack.c.bf16 %v2841_v29, %v2837_v27  ;;  %v2733_v27 = vld [vmem:[%s3674_s5 + $0xe4] ss:$8 sps:$4 sm:$0xff]   ;;  %v2736_v29 = vld [vmem:[%s3674_s5 + $0xf4] ss:$8 sps:$4 sm:$0xff]  }
 0x19d   : > { %859 = vmatprep.subr.bf16.mxu1 %v842_v31  ;;  %1443 = vmatpush1.bf16.msra.mxu0 %v2704_v10 }
 0x19e   : > { %860 = vmatpush1.bf16.msra.mxu1 %v841_v30  ;;  %1444 = vmatprep.subr.bf16.mxu0 %v2709_v11  ;;  %v2734_v30 = vld [vmem:[%s3674_s5 + $0xf0] ss:$8 sps:$4 sm:$0xff]  }
 0x19f   : > { %v2843_v32 = vpop.eup %2842 }
 0x1a0   : > { %v2845_v34 = vpop.eup %2844 }
 0x1a1   : > { %v2847_v37 = vpop.eup %2846  ;;  %1445 = vmatpush1.bf16.msra.mxu0 %v2707_v12 }
 0x1a2   : > { %v2849_v39 = vpop.eup %2848  ;;  %v843_v40 = vpack.c.bf16 %v2847_v37, %v2843_v32  ;;  %1446 = vmatprep.subr.bf16.mxu0 %v2712_v13  ;;  %v2737_v13 = vld [vmem:[%s3674_s5 + $0x100] ss:$8 sps:$4 sm:$0xff]  }
 0x1a3   : > { %v844_v41 = vpack.c.bf16 %v2849_v39, %v2845_v34 }
 0x1a4   : > { %v854_v42 = vsel %vm739_vm2, %v843_v40, 0 }
 0x1a5   : > { %2328 = vmatprep.subr.msk.bf16.mxu1 %vm739_vm2, %v844_v41  ;;  %1447 = vmatpush1.bf16.msra.mxu0 %v2710_v14  ;;  %v2742_v14 = vld [vmem:[%s3674_s5 + $0x114] ss:$8 sps:$4 sm:$0xff]  }
 0x1a6   : > { %862 = vmatpush1.bf16.msra.mxu1 %v854_v42  ;;  %1448 = vmatprep.subr.bf16.mxu0 %v2715_v15 }
 0x1a7   : > { %996 = vmatprep.subr.bf16.mxu1 %v2935_v33 }
 0x1a9   : > { %2329 = vmatmul.mubr.msk.bf16.vlgmr.msra.gmra.mrb[0].mxu1 %vm493_vm0, %v2677_v43  ;;  %1449 = vmatpush1.bf16.msra.mxu0 %v2713_v16  ;;  %v2740_v16 = vld [vmem:[%s3674_s5 + $0x110] ss:$8 sps:$4 sm:$0xff]   ;;  %vm1674_vm0 = vcmask 261120  }
 0x1aa   : > { %997 = vmatpush1.bf16.msra.mxu1 %v2678_v44  ;;  %1450 = vmatprep.subr.bf16.mxu0 %v2718_v17  ;;  %v2745_v17 = vld [vmem:[%s3674_s5 + $0x124] ss:$8 sps:$4 sm:$0xff]  }
 0x1ab   : > { %998 = vmatprep.subr.bf16.mxu1 %v2935_v33 }
 0x1ad   : > { %1451 = vmatpush1.bf16.msra.mxu0 %v2716_v18  ;;  %v2743_v18 = vld [vmem:[%s3674_s5 + $0x120] ss:$8 sps:$4 sm:$0xff]  }
 0x1ae   : > { %999 = vmatpush1.bf16.msra.mxu1 %v2679_v45  ;;  %1452 = vmatprep.subr.bf16.mxu0 %v2721_v19  ;;  %v2748_v19 = vld [vmem:[%s3674_s5 + $0x134] ss:$8 sps:$4 sm:$0xff]  }
 0x1af   : > { %1000 = vmatprep.subr.bf16.mxu1 %v2935_v33 }
 0x1b1   : > { %1453 = vmatpush1.bf16.msra.mxu0 %v2719_v20  ;;  %v2746_v20 = vld [vmem:[%s3674_s5 + $0x130] ss:$8 sps:$4 sm:$0xff]  }
 0x1b2   : > { %1001 = vmatpush1.bf16.msra.mxu1 %v2680_v46  ;;  %1454 = vmatprep.subr.bf16.mxu0 %v2724_v21  ;;  %v2751_v21 = vld [vmem:[%s3674_s5 + $0x144] ss:$8 sps:$4 sm:$0xff]  }
 0x1b3   : > { %1002 = vmatprep.subr.bf16.mxu1 %v2935_v33 }
 0x1b5   : > { %1455 = vmatpush1.bf16.msra.mxu0 %v2722_v22  ;;  %v2749_v22 = vld [vmem:[%s3674_s5 + $0x140] ss:$8 sps:$4 sm:$0xff]  }
 0x1b6   : > { %1003 = vmatpush1.bf16.msra.mxu1 %v2681_v47  ;;  %1456 = vmatprep.subr.bf16.mxu0 %v2727_v23  ;;  %v2739_v47 = vld [vmem:[%s3674_s5 + $0x104] ss:$8 sps:$4 sm:$0xff]   ;;  %v2754_v23 = vld [vmem:[%s3674_s5 + $0x154] ss:$8 sps:$4 sm:$0xff]  }
 0x1b7   : > { %1004 = vmatprep.subr.bf16.mxu1 %v2935_v33 }
 0x1b9   : > { %1457 = vmatpush1.bf16.msra.mxu0 %v2725_v24  ;;  %v2752_v24 = vld [vmem:[%s3674_s5 + $0x150] ss:$8 sps:$4 sm:$0xff]  }
 0x1ba   : > { %1005 = vmatpush1.bf16.msra.mxu1 %v2682_v48  ;;  %1458 = vmatprep.subr.bf16.mxu0 %v2730_v25  ;;  %v2757_v25 = vld [vmem:[%s3674_s5 + $0x164] ss:$8 sps:$4 sm:$0xff]  }
 0x1bb   : > { %1006 = vmatprep.subr.bf16.mxu1 %v2935_v33 }
 0x1bd   : > { %1459 = vmatpush1.bf16.msra.mxu0 %v2728_v26  ;;  %v2755_v26 = vld [vmem:[%s3674_s5 + $0x160] ss:$8 sps:$4 sm:$0xff]  }
 0x1be   : > { %1007 = vmatpush1.bf16.msra.mxu1 %v2683_v49  ;;  %1460 = vmatprep.subr.bf16.mxu0 %v2733_v27  ;;  %v2760_v27 = vld [vmem:[%s3674_s5 + $0x174] ss:$8 sps:$4 sm:$0xff]  }
 0x1bf   : > { %1008 = vmatprep.subr.bf16.mxu1 %v2935_v33 }
 0x1c1   : > { %1461 = vmatpush1.bf16.msra.mxu0 %v2731_v28  ;;  %v2758_v28 = vld [vmem:[%s3674_s5 + $0x170] ss:$8 sps:$4 sm:$0xff]  }
 0x1c2   : > { %1009 = vmatpush1.bf16.msra.mxu1 %v2684_v50  ;;  %1462 = vmatprep.subr.bf16.mxu0 %v2736_v29  ;;  %v2763_v29 = vld [vmem:[%s3674_s5 + $0x184] ss:$8 sps:$4 sm:$0xff]  }
 0x1c3   : > { %1010 = vmatprep.subr.bf16.mxu1 %v2935_v33 }
 0x1c5   : > { %1463 = vmatpush1.bf16.msra.mxu0 %v2734_v30  ;;  %v2761_v30 = vld [vmem:[%s3674_s5 + $0x180] ss:$8 sps:$4 sm:$0xff]  }
 0x1c6   : > { %1011 = vmatpush1.bf16.msra.mxu1 %v2685_v51  ;;  %1475 = vmatprep.subr.bf16.mxu0 %v2739_v47  ;;  %v2772_v47 = vld [vmem:[%s3677_s8 + $0x18] sm:$0xff]  }
 0x1c7   : > { %1012 = vmatprep.subr.bf16.mxu1 %v2935_v33 }
 0x1ca   : > { %1013 = vmatpush1.bf16.msra.mxu1 %v2686_v52 }
 0x1cb   : > { %1014 = vmatprep.subr.bf16.mxu1 %v2935_v33 }
 0x1ce   : > { %1015 = vmatpush1.bf16.msra.mxu1 %v2687_v53 }
 0x1cf   : > { %1016 = vmatprep.subr.bf16.mxu1 %v2935_v33 }
 0x1d2   : > { %1017 = vmatpush1.bf16.msra.mxu1 %v994_v55 }
 0x1d3   : > { %1678 = vmatprep.subr.bf16.mxu1 %v2935_v33 }
 0x27c   : > { %v893_v56 = vpop.f32.mrb[0].mxu1 }
 0x27d   : > { %v895_v57 = vpop.f32.mrb[1].mxu1 }
 0x27e   : > { %v897_v58 = vpop.f32.mrb[2].mxu1 }
 0x27f   : > { %v923_v59 = vpack.c.bf16 %v897_v58, %v893_v56  ;;  %v899_v60 = vpop.f32.mrb[3].mxu1 }
 0x280   : > { %v924_v61 = vpack.c.bf16 %v899_v60, %v895_v57 }
 0x282   : > { %2341 = vmatprep.mubr.msk.bf16.mxu1 %vm988_vm8, %v924_v61 }
 0x283   : > { %1029 = vmatmul.mubr.bf16.vlgmr.msra.gmra.mrb[4].mxu1 %v923_v59 }
 0x356   : > { %v1030_v31 = vpop.f32.mrb[4].mxu1 }
 0x357   : > { %v1032_v32 = vpop.f32.mrb[5].mxu1  ;;  %v1040_v34 = vrot.slane %v1030_v31, 1  ;;  %v1049_v37 = vrot.slane %v1030_v31, 2  ;;  %v1059_v39 = vrot.slane %v1030_v31, 3  ;;  %v1068_v40 = vrot.slane %v1030_v31, 4 }
 0x358   : > { %v1033_v41 = vpop.f32.mrb[6].mxu1  ;;  %v1139_v32 = vld [vmem:[%s3674_s5 + $0x1a0] sm:$0x33] }
 0x359   : > { %v1035_v42 = vpop.f32.mrb[7].mxu1  ;;  %v1050_v43 = vrot.slane %v1033_v41, 2  ;;  %v1041_v44 = vrot.slane %v1033_v41, 1  ;;  %v1069_v45 = vrot.slane %v1033_v41, 4  ;;  %v1060_v46 = vrot.slane %v1033_v41, 3 }
 0x35b   : > { %v1051_v48 = vsel %vm739_vm2, %v1049_v37, %v1050_v43  ;;  %v1042_v49 = vsel %vm1039_vm9, %v1040_v34, %v1041_v44  ;;  %v1070_v50 = vsel %vm992_vm7, %v1068_v40, %v1069_v45  ;;  %v1061_v51 = vsel %vm1058_vm10, %v1059_v39, %v1060_v46  ;;  %v2764_v34 = vld [vmem:[%s3674_s5 + $0x190] ss:$8 sps:$4 sm:$0xff]  }
 0x35c   : > { %v2635_v52 = vpack.i.bf16 %v1050_v43, %v1051_v48  ;;  %v2630_v53 = vpack.i.bf16 %v1041_v44, %v1042_v49  ;;  %v2645_v54 = vpack.i.bf16 %v1069_v45, %v1070_v50  ;;  %v2640_v55 = vpack.i.bf16 %v1060_v46, %v1061_v51  ;;  %v2769_v44 = vld [vmem:[%s3677_s8] sm:$0xff]   ;;  %v2770_v45 = vld [vmem:[%s3677_s8 + $0x8] sm:$0xff]   ;;  %v2771_v46 = vld [vmem:[%s3677_s8 + $0x10] sm:$0xff]  }
 0x35d   : > { %v2395_v37 = vcombine.high %v1139_v32, %v1139_v32  ;;  %v2394_v39 = vcombine.low %v1139_v32, %v1139_v32  ;;  %1679 = vmatpush1.bf16.msra.mxu1 %v2769_v44  ;;  %v2773_v48 = vld [vmem:[%s3677_s8 + $0x20] sm:$0xff]   ;;  %v2774_v49 = vld [vmem:[%s3677_s8 + $0x28] sm:$0xff]   ;;  %v2775_v50 = vld [vmem:[%s3677_s8 + $0x30] sm:$0xff]   ;;  %vm1738_vm2 = vcmask 523264  }
 0x35e   : > { %2636 = vrot.lane.b32.xlu1 %v2635_v52, %s2936_s23  ;;  %2631 = vrot.lane.b32.xlu0 %v2630_v53, %s2932_s20  ;;  %v2776_v51 = vld [vmem:[%s3677_s8 + $0x38] sm:$0xff]   ;;  %v2777_v52 = vld [vmem:[%s3677_s8 + $0x40] sm:$0xff]   ;;  %s2942_s23 = smov [#allocation3]  }
 0x35f   : > { %v1427_v40 = vsel %vm1425_vm13, %v2394_v39, 0  ;;  %1680 = vmatprep.subr.bf16.mxu1 %v2935_v33  ;;  %v1144_v53 = vld [vmem:[%s3675_s6] sm:$0x3]  ;;  %v2782_v32 = vld [vmem:[%s3678_s9 + $0x8] sm:$0xff]   ;;  %v2785_v39 = vld [vmem:[%s3678_s9 + $0x58] sm:$0xff]  }
 0x360   : > { %v2790_v44 = vld [vmem:[%s3678_s9 + $0x28] sm:$0xff]  }
 0x361   : > { %1681 = vmatpush1.bf16.msra.mxu1 %v2770_v45  ;;  %v2791_v45 = vld [vmem:[%s3678_s9 + $0x70] sm:$0xff]  }
 0x362   : > { %2646 = vrot.lane.b32.xlu1 %v2645_v54, %s2937_s18  ;;  %2641 = vrot.lane.b32.xlu0 %v2640_v55, %s2938_s21  ;;  %v1149_v54 = vrot.slane %v1144_v53, %v636_v36  ;;  %v1153_v55 = vrot.slane %v1144_v53, %v640_v38 }
 0x363   : > { %1682 = vmatprep.subr.bf16.mxu1 %v2935_v33 }
 0x365   : > { %1683 = vmatpush1.bf16.msra.mxu1 %v2771_v46  ;;  %v2792_v46 = vld [vmem:[%s3678_s9 + $0x30] sm:$0xff]  }
 0x366   : > { %1684 = vmatprep.subr.bf16.mxu1 %v2935_v33 }
 0x369   : > { %1685 = vmatpush1.bf16.msra.mxu1 %v2772_v47  ;;  %v2793_v47 = vld [vmem:[%s3678_s9 + $0x78] sm:$0xff]  }
 0x36a   : > { %1686 = vmatprep.subr.bf16.mxu1 %v2935_v33 }
 0x36d   : > { %1687 = vmatpush1.bf16.msra.mxu1 %v2773_v48  ;;  %v2794_v48 = vld [vmem:[%s3678_s9 + $0x38] sm:$0xff]  }
 0x36e   : > { %1688 = vmatprep.subr.bf16.mxu1 %v2935_v33 }
 0x371   : > { %1689 = vmatpush1.bf16.msra.mxu1 %v2774_v49 }
 0x372   : > { %1690 = vmatprep.subr.bf16.mxu1 %v2935_v33 }
 0x375   : > { %1691 = vmatpush1.bf16.msra.mxu1 %v2775_v50 }
 0x376   : > { %1692 = vmatprep.subr.bf16.mxu1 %v2935_v33 }
 0x379   : > { %1693 = vmatpush1.bf16.msra.mxu1 %v2776_v51 }
 0x37a   : > { %1694 = vmatprep.subr.bf16.mxu1 %v2935_v33 }
 0x37d   : > { %1695 = vmatpush1.bf16.msra.mxu1 %v2777_v52 }
 0x37e   : > { %1696 = vmatprep.subr.bf16.mxu1 %v2935_v33 }
 0x3d0   : > { %v2637_v56 = vpop.permute.xlu1 %2636  ;;  %v2632_v57 = vpop.permute.xlu0 %2631 }
 0x3d1   : > { %v2634_v58 = vunpack.i.h.bf16 %v2632_v57  ;;  %v2633_v59 = vunpack.i.l.bf16 %v2632_v57  ;;  %v2638_v60 = vunpack.i.l.bf16 %v2637_v56  ;;  %v2639_v61 = vunpack.i.h.bf16 %v2637_v56 }
 0x3d3   : > { %v1078_v62 = vsel %vm600_vm4, %v1033_v41, %v2634_v58  ;;  %v1077_v63 = vsel %vm600_vm4, %v1030_v31, %v2633_v59  ;;  %v1079_v6 = vsel %vm988_vm8, %v2633_v59, %v2638_v60  ;;  %v1080_v7 = vsel %vm988_vm8, %v2634_v58, %v2639_v61  ;;  %v2766_v31 = vld [vmem:[%s3674_s5 + $0x194] ss:$8 sps:$4 sm:$0xff]  }
 0x3d4   : > { %v1140_v1 = vpack.c.bf16 %v1078_v62, %v1077_v63  ;;  %v3336_v2 = vpop.permute.xlu1 %2646  ;;  %v3338_v3 = vpop.permute.xlu0 %2641 }
 0x3d5   : > { %v2644_v4 = vunpack.i.h.bf16 %v3338_v3  ;;  %v2643_v5 = vunpack.i.l.bf16 %v3338_v3  ;;  %v2649_v8 = vunpack.i.h.bf16 %v3336_v2  ;;  %v2648_v9 = vunpack.i.l.bf16 %v3336_v2 }
 0x3d7   : > { %v1082_v10 = vsel %vm1081_vm11, %v1079_v6, %v2643_v5  ;;  %v1083_v11 = vsel %vm1081_vm11, %v1080_v7, %v2644_v4  ;;  %v1143_v15 = vpack.c.bf16 %v2649_v8, %v2648_v9  ;;  %v1086_v41 = vsel %vm1084_vm14, %v2644_v4, %v2649_v8 }
 0x3d8   : > { %v1141_v12 = vpack.c.bf16 %v1083_v11, %v1082_v10  ;;  %v1085_v42 = vsel %vm1084_vm14, %v2643_v5, %v2648_v9 }
 0x3d9   : > { %v1142_v43 = vpack.c.bf16 %v1086_v41, %v1085_v42  ;;  %v2787_v41 = vld [vmem:[%s3678_s9 + $0x60] sm:$0xff]  }
 0x3da   : > { %1464 = vmatprep.mubr.bf16.mxu0 %v1141_v12  ;;  %v2788_v42 = vld [vmem:[%s3678_s9 + $0x20] sm:$0xff]  }
 0x3db   : > { %1465 = vmatmul.mubr.bf16.vlgmr.msra.gmra.mrb[8].mxu0 %v1140_v1 }
 0x3dc   : > { %1476 = vmatpush1.bf16.msra.mxu0 %v2737_v13  ;;  %2397 = vmatprep.mubr.msk.bf16.mxu0 %vm1421_vm12, %v1143_v15 }
 0x3dd   : > { %1477 = vmatprep.subr.bf16.mxu0 %v2742_v14 }
 0x3e0   : > { %1478 = vmatpush1.bf16.msra.mxu0 %v2740_v16 }
 0x3e1   : > { %1479 = vmatprep.subr.bf16.mxu0 %v2745_v17 }
 0x3e4   : > { %1480 = vmatpush1.bf16.msra.mxu0 %v2743_v18 }
 0x3e5   : > { %1481 = vmatprep.subr.bf16.mxu0 %v2748_v19 }
 0x3e8   : > { %1482 = vmatpush1.bf16.msra.mxu0 %v2746_v20 }
 0x3e9   : > { %1483 = vmatprep.subr.bf16.mxu0 %v2751_v21  ;;  %v1538_v21 = vld [vmem:[%s3676_s7] sm:$0x7] }
 0x3ec   : > { %1484 = vmatpush1.bf16.msra.mxu0 %v2749_v22  ;;  %v2778_v22 = vld [vmem:[%s3677_s8 + $0x48] sm:$0xff]  }
 0x3ed   : > { %1485 = vmatprep.subr.bf16.mxu0 %v2754_v23  ;;  %1697 = vmatpush1.bf16.msra.mxu1 %v2778_v22  ;;  %v2814_v22 = vld [vmem:[%s3682_s13 + $0x10] sm:$0xff]  }
 0x3f0   : > { %1486 = vmatpush1.bf16.msra.mxu0 %v2752_v24 }
 0x3f1   : > { %1487 = vmatprep.subr.bf16.mxu0 %v2757_v25 }
 0x3f4   : > { %1488 = vmatpush1.bf16.msra.mxu0 %v2755_v26 }
 0x3f5   : > { %1489 = vmatprep.subr.bf16.mxu0 %v2760_v27 }
 0x3f8   : > { %1490 = vmatpush1.bf16.msra.mxu0 %v2758_v28 }
 0x3f9   : > { %1491 = vmatprep.subr.bf16.mxu0 %v2763_v29  ;;  %v2779_v29 = vld [vmem:[%s3678_s9 + $0x40] sm:$0xff]  }
 0x3fa   : > { %2457 = vmatprep.subr.bf16.mxu1 %v2779_v29 }
 0x3fc   : > { %1492 = vmatpush1.bf16.msra.mxu0 %v2761_v30  ;;  %v2780_v30 = vld [vmem:[%s3678_s9] sm:$0xff]  }
 0x3fd   : > { %1493 = vmatprep.subr.bf16.mxu0 %v2766_v31  ;;  %v2781_v31 = vld [vmem:[%s3678_s9 + $0x48] sm:$0xff]  }
 0x400   : > { %1494 = vmatpush1.bf16.msra.mxu0 %v2764_v34  ;;  %v2783_v34 = vld [vmem:[%s3678_s9 + $0x50] sm:$0xff]  }
 0x401   : > { %2396 = vmatprep.subr.msk.bf16.mxu0 %vm1425_vm13, %v2395_v37  ;;  %v2784_v37 = vld [vmem:[%s3678_s9 + $0x10] sm:$0xff]  }
 0x404   : > { %1496 = vmatpush1.bf16.msra.mxu0 %v1427_v40  ;;  %v2786_v40 = vld [vmem:[%s3678_s9 + $0x18] sm:$0xff]  }
 0x407   : > { %1508 = vmatmul.mubr.bf16.vlgmr.msra.gmra.mrb[8].mxu0 %v1142_v43  ;;  %v2789_v43 = vld [vmem:[%s3678_s9 + $0x68] sm:$0xff]  }
 0x408   : > { %1583 = vmatprep.mubr.bf16.mxu0 %v2935_v33 }
 0x4da   : > { %v1509_v56 = vpop.f32.mrb[8].mxu0 }
 0x4db   : > { %v2531_v57 = vadd.f32 %v1509_v56, %v1149_v54  ;;  %v1511_v58 = vpop.f32.mrb[9].mxu0 }
 0x4dc   : > { %v2532_v59 = vadd.f32 %v1511_v58, %v1153_v55  ;;  %v1513_v60 = vpop.f32.mrb[10].mxu0 }
 0x4dd   : > { %v1518_v61 = vsub.f32 0.0, %v2531_v57  ;;  %v2533_v62 = vadd.f32 %v1513_v60, %v1149_v54  ;;  %v1515_v63 = vpop.f32.mrb[11].mxu0 }
 0x4de   : > { %v1519_v1 = vsub.f32 0.0, %v2532_v59  ;;  %v2534_v2 = vadd.f32 %v1515_v63, %v1153_v55 }
 0x4df   : > { %v1522_v3 = vmul.f32 1.442695, %v1518_v61  ;;  %v1520_v4 = vsub.f32 0.0, %v2533_v62 }
 0x4e0   : > { %v1524_v5 = vmul.f32 1.442695, %v1519_v1  ;;  %v1521_v6 = vsub.f32 0.0, %v2534_v2  ;;  %v2795_v2 = vld [vmem:[%s3678_s9 + $0x80] sm:$0xff]  }
 0x4e1   : > { %2850 = vpow2.f32 %v1522_v3  ;;  %v1526_v7 = vmul.f32 1.442695, %v1520_v4 }
 0x4e2   : > { %2852 = vpow2.f32 %v1524_v5  ;;  %v1528_v36 = vmul.f32 1.442695, %v1521_v6  ;;  %v2796_v5 = vld [vmem:[%s3678_s9 + $0x88] sm:$0xff]   ;;  %v2797_v6 = vld [vmem:[%s3678_s9 + $0x90] sm:$0xff]  }
 0x4e3   : > { %2854 = vpow2.f32 %v1526_v7  ;;  %v2798_v7 = vld [vmem:[%s3678_s9 + $0x98] sm:$0xff]  }
 0x4e4   : > { %2856 = vpow2.f32 %v1528_v36  ;;  %v2799_v36 = vld [vmem:[%s3678_s9 + $0xa0] sm:$0xff]  }
 0x4eb   : > { %v2851_v35 = vpop.eup %2850 }
 0x4ec   : > { %v2853_v38 = vpop.eup %2852  ;;  %v1530_v8 = vadd.f32 1.0, %v2851_v35  ;;  %v2800_v35 = vld [vmem:[%s3678_s9 + $0xa8] sm:$0xff]  }
 0x4ed   : > { %v2855_v9 = vpop.eup %2854  ;;  %v1531_v10 = vadd.f32 1.0, %v2853_v38  ;;  %v2801_v38 = vld [vmem:[%s3678_s9 + $0xb0] sm:$0xff]  }
 0x4ee   : > { %v2857_v11 = vpop.eup %2856  ;;  %2858 = vrcp.f32 %v1530_v8  ;;  %v1532_v12 = vadd.f32 1.0, %v2855_v9  ;;  %v2802_v8 = vld [vmem:[%s3678_s9 + $0xb8] sm:$0xff]   ;;  %v2803_v9 = vld [vmem:[%s3678_s9 + $0xc0] sm:$0xff]  }
 0x4ef   : > { %2860 = vrcp.f32 %v1531_v10  ;;  %v1533_v13 = vadd.f32 1.0, %v2857_v11 }
 0x4f0   : > { %2862 = vrcp.f32 %v1532_v12  ;;  %v2804_v12 = vld [vmem:[%s3680_s11] sm:$0xff]  }
 0x4f1   : > { %2864 = vrcp.f32 %v1533_v13  ;;  %v2805_v13 = vld [vmem:[%s3680_s11 + $0x8] sm:$0xff]  }
 0x4f8   : > { %v2859_v14 = vpop.eup %2858 }
 0x4f9   : > { %v2861_v15 = vpop.eup %2860 }
 0x4fa   : > { %v2863_v16 = vpop.eup %2862 }
 0x4fb   : > { %v2865_v17 = vpop.eup %2864  ;;  %v1539_v18 = vpack.c.bf16 %v2863_v16, %v2859_v14  ;;  %v2807_v14 = vld [vmem:[%s3680_s11 + $0x18] sm:$0xff]   ;;  %v2809_v16 = vld [vmem:[%s3680_s11 + $0x28] sm:$0xff]  }
 0x4fc   : > { %v1540_v19 = vpack.c.bf16 %v2865_v17, %v2861_v15  ;;  %v2808_v15 = vld [vmem:[%s3680_s11 + $0x20] sm:$0xff]   ;;  %v2810_v17 = vld [vmem:[%s3680_s11 + $0x30] sm:$0xff]  }
 0x4fd   : > { %v1546_v20 = vsel %vm1058_vm10, %v1539_v18, 0  ;;  %v2811_v18 = vld [vmem:[%s3680_s11 + $0x38] ss:$0 sps:$4 sm:$0xff]  }
 0x4fe   : > { %2398 = vmatprep.subr.msk.bf16.mxu0 %vm1058_vm10, %v1540_v19  ;;  %v2096_v19 = vsel %vm992_vm7, %v2811_v18, 0 }
 0x4ff   : > { %1552 = vmatpush1.bf16.msra.mxu0 %v1546_v20  ;;  %v2812_v20 = vld [vmem:[%s3682_s13] sm:$0xff]  }
 0x500   : > { %2495 = vmatprep.subr.bf16.mxu0 %v2930_v0 }
 0x502   : > { %2399 = vmatmul.mubr.msk.bf16.vlgmr.msra.gmra.mrb[12].mxu0 %vm1541_vm15, %v1538_v21  ;;  %v2813_v21 = vld [vmem:[%s3682_s13 + $0x8] sm:$0xff]  }
 0x503   : > { %2496 = vmatpush3.bf16.msra.mxu0 %v2804_v12  ;;  %2511 = vmatprep.mubr.msk.bf16.mxu0 %vm2941_vm3, %v2930_v0 }
 0x504   : > { %2497 = vmatprep.subr.bf16.mxu0 %v2930_v0 }
 0x507   : > { %2498 = vmatpush3.bf16.msra.mxu0 %v2805_v13 }
 0x508   : > { %2499 = vmatprep.subr.bf16.mxu0 %v2930_v0 }
 0x5d5   : > { %v1585_v23 = vpop.f32.mrb[12].mxu0 }
 0x5d6   : > { %v1587_v24 = vpop.f32.mrb[13].mxu0  ;;  %v1612_v27 = vpack.c.bf16 %v1585_v23, %v1585_v23  ;;  %v2815_v23 = vld [vmem:[%s3682_s13 + $0x18] sm:$0xff]  }
 0x5d7   : > { %v1613_v25 = vpack.c.bf16 %v1587_v24, %v1587_v24  ;;  %v1589_v26 = vpop.f32.mrb[14].mxu0  ;;  %v2816_v24 = vld [vmem:[%s3682_s13 + $0x20] sm:$0xff]  }
 0x5d8   : > { %v1590_v28 = vpop.f32.mrb[15].mxu0 }
 0x5d9   : > { %2410 = vmatprep.mubr.msk.bf16.mxu1 %vm1674_vm0, %v1613_v25 }
 0x5da   : > { %1711 = vmatmul.mubr.bf16.vlgmr.msra.gmra.mrb[8].mxu1 %v1612_v27 }
 0x5db   : > { %2458 = vmatpush3.bf16.msra.mxu1 %v2780_v30  ;;  %v1794_v30 = vld [vmem:[%s3679_s10] sm:$0x1] }
 0x5dc   : > { %2459 = vmatprep.subr.bf16.mxu1 %v2781_v31 }
 0x5df   : > { %2460 = vmatpush3.bf16.msra.mxu1 %v2782_v32 }
 0x5e0   : > { %2461 = vmatprep.subr.bf16.mxu1 %v2783_v34 }
 0x5e3   : > { %2462 = vmatpush3.bf16.msra.mxu1 %v2784_v37 }
 0x5e4   : > { %2463 = vmatprep.subr.bf16.mxu1 %v2785_v39 }
 0x5e7   : > { %2464 = vmatpush3.bf16.msra.mxu1 %v2786_v40 }
 0x5e8   : > { %2465 = vmatprep.subr.bf16.mxu1 %v2787_v41 }
 0x5eb   : > { %2466 = vmatpush3.bf16.msra.mxu1 %v2788_v42 }
 0x5ec   : > { %2467 = vmatprep.subr.bf16.mxu1 %v2789_v43  ;;  %v2045_v43 = vld [vmem:[%s3681_s12] sm:$0x1] }
 0x5ef   : > { %2468 = vmatpush3.bf16.msra.mxu1 %v2790_v44 }
 0x5f0   : > { %2469 = vmatprep.subr.bf16.mxu1 %v2791_v45 }
 0x5f3   : > { %2470 = vmatpush3.bf16.msra.mxu1 %v2792_v46 }
 0x5f4   : > { %2471 = vmatprep.subr.bf16.mxu1 %v2793_v47 }
 0x5f7   : > { %2472 = vmatpush3.bf16.msra.mxu1 %v2794_v48 }
 0x5f8   : > { %1989 = vmatprep.subr.bf16.mxu1 %v2935_v33 }
 0x6ad   : > { %v1712_v49 = vpop.f32.mrb[8].mxu1 }
 0x6ae   : > { %v1714_v50 = vpop.f32.mrb[9].mxu1  ;;  %v1723_v51 = vrot.slane %v1712_v49, 2  ;;  %v1719_v52 = vrot.slane %v1712_v49, 1  ;;  %v1731_v55 = vrot.slane %v1712_v49, 4  ;;  %v1727_v56 = vrot.slane %v1712_v49, 3 }
 0x6af   : > { %v1715_v53 = vpop.f32.mrb[10].mxu1  ;;  %v2150_v50 = vld [vmem:[%s3683_s14] sm:$0x1] }
 0x6b0   : > { %1724 = vrot.lane.b32.xlu1 %v1723_v51, %s2939_s16  ;;  %1720 = vrot.lane.b32.xlu0 %v1719_v52, %s2937_s18  ;;  %v1716_v54 = vpop.f32.mrb[11].mxu1  ;;  %s3627_s16 = scalar_lea.hbm %s3684_s15, %s2453_s24  ;;  %s2870_s18 = sshll.u32 %s2942_s23, 4  ;;  %s2871_s18 = int_to_ptr.vmem [resolvable:$false] %s2870_s18 }
 0x6b1   : > { %s2872_s21 = scalar_lea.vmem %s2871_s18, 32 }
 0x6b4   : > { %1732 = vrot.lane.b32.xlu1 %v1731_v55, %s2940_s17  ;;  %1728 = vrot.lane.b32.xlu0 %v1727_v56, %s2934_s25  ;;  %s485_s25 = sand.u32 1, %s2920_s19  }
 0x6b5   : > { %s486_s27 = scalar_lea.vmem [#allocation3], %s485_s25  ;;  %s2233_s22 = scalar_lea.sflag [#allocation4], %s485_s25 }
 0x6b6   : > { %s2245_s29 = sshll.u32 %s486_s27, 4  ;;  %s3629_s29 = int_to_ptr.vmem [resolvable:$true] %s2245_s29 }
 0x6b7   : > { %s2866_s17 = scalar_lea.vmem %s3629_s29, 16  ;;  %p2873_p0 = scmp.lt.s32.totalorder %s3629_s29, %s2871_s18 }
 0x6b8   : > { %p2867_p11 = scmp.ne.s32.totalorder %s3629_s29, %s2866_s17  ;;  %p2874_p1 = scmp.lt.s32.totalorder %s2872_s21, %s2866_s17 }
 0x6ba   : > { %p2868_p12 = pnand %p2867_p11, %p3061_p5  ;;  %p2875_p2 = por %p2874_p1, %p2873_p0 }
 0x6bc   : > { %p2869_p13 = pneg %p2868_p12 }
 0x6be   : > { %p2876_p3 = pnand %p2875_p2, %p2869_p13 }
 0x722   : > { %v1725_v57 = vpop.permute.xlu1 %1724  ;;  %v1721_v58 = vpop.permute.xlu0 %1720 }
 0x723   : > { %v1735_v59 = vsel %vm1084_vm14, %v1712_v49, %v1721_v58  ;;  %v1736_v60 = vsel %vm1674_vm0, %v1721_v58, %v1725_v57 }
 0x724   : > { %v1790_v3 = vpack.c.bf16 %v1735_v59, %v1735_v59 }
 0x726   : > { %v1729_v61 = vpop.permute.xlu0 %1728  ;;  %v1733_v62 = vpop.permute.xlu1 %1732 }
 0x727   : > { %v1737_v63 = vsel %vm605_vm5, %v1736_v60, %v1729_v61  ;;  %v1793_v4 = vpack.c.bf16 %v1733_v62, %v1733_v62  ;;  %v1739_v10 = vsel %vm1738_vm2, %v1729_v61, %v1733_v62  ;;  %vm2091_vm5 = vcmask 982016  }
 0x728   : > { %v1791_v1 = vpack.c.bf16 %v1737_v63, %v1737_v63  ;;  %v1792_v11 = vpack.c.bf16 %v1739_v10, %v1739_v10 }
 0x72a   : > { %1981 = vmatprep.mubr.bf16.mxu1 %v1791_v1 }
 0x72b   : > { %1982 = vmatmul.mubr.bf16.vlgmr.msra.gmra.mrb[12].mxu1 %v1790_v3 }
 0x72c   : > { %1990 = vmatpush1.bf16.msra.mxu1 %v2795_v2  ;;  %2436 = vmatprep.mubr.msk.bf16.mxu1 %vm1945_vm1, %v1793_v4 }
 0x72d   : > { %1991 = vmatprep.subr.bf16.mxu1 %v2935_v33 }
 0x730   : > { %1992 = vmatpush1.bf16.msra.mxu1 %v2796_v5 }
 0x731   : > { %1993 = vmatprep.subr.bf16.mxu1 %v2935_v33 }
 0x734   : > { %1994 = vmatpush1.bf16.msra.mxu1 %v2797_v6 }
 0x735   : > { %1995 = vmatprep.subr.bf16.mxu1 %v2935_v33 }
 0x738   : > { %1996 = vmatpush1.bf16.msra.mxu1 %v2798_v7 }
 0x739   : > { %1997 = vmatprep.subr.bf16.mxu1 %v2935_v33 }
 0x73c   : > { %1998 = vmatpush1.bf16.msra.mxu1 %v2799_v36 }
 0x73d   : > { %1999 = vmatprep.subr.bf16.mxu1 %v2935_v33 }
 0x740   : > { %2000 = vmatpush1.bf16.msra.mxu1 %v2800_v35 }
 0x741   : > { %2001 = vmatprep.subr.bf16.mxu1 %v2935_v33 }
 0x744   : > { %2002 = vmatpush1.bf16.msra.mxu1 %v2801_v38 }
 0x745   : > { %2003 = vmatprep.subr.bf16.mxu1 %v2935_v33 }
 0x748   : > { %2004 = vmatpush1.bf16.msra.mxu1 %v2802_v8 }
 0x749   : > { %2005 = vmatprep.subr.bf16.mxu1 %v2935_v33  ;;  %v2806_v33 = vld [vmem:[%s3680_s11 + $0x10] sm:$0xff]  }
 0x74a   : > { %2500 = vmatpush3.bf16.msra.mxu0 %v2806_v33 }
 0x74b   : > { %2501 = vmatprep.subr.bf16.mxu0 %v2930_v0 }
 0x74c   : > { %2006 = vmatpush1.bf16.msra.mxu1 %v2803_v9 }
 0x74d   : > { %2515 = vmatprep.subr.bf16.mxu1 %v2930_v0 }
 0x74e   : > { %2502 = vmatpush3.bf16.msra.mxu0 %v2807_v14 }
 0x74f   : > { %2022 = vmatmul.mubr.bf16.vlgmr.msra.gmra.mrb[16].mxu1 %v1792_v11  ;;  %2503 = vmatprep.subr.bf16.mxu0 %v2930_v0 }
 0x750   : > { %2527 = vmatprep.mubr.msk.bf16.mxu1 %vm2941_vm3, %v2930_v0  ;;  %2516 = vmatpush3.bf16.msra.mxu1 %v2812_v20 }
 0x751   : > { %2517 = vmatprep.subr.bf16.mxu1 %v2930_v0 }
 0x752   : > { %2504 = vmatpush3.bf16.msra.mxu0 %v2808_v15 }
 0x753   : > { %2505 = vmatprep.subr.bf16.mxu0 %v2930_v0 }
 0x754   : > { %2518 = vmatpush3.bf16.msra.mxu1 %v2813_v21 }
 0x755   : > { %2519 = vmatprep.subr.bf16.mxu1 %v2930_v0 }
 0x756   : > { %2506 = vmatpush3.bf16.msra.mxu0 %v2809_v16 }
 0x757   : > { %2507 = vmatprep.subr.bf16.mxu0 %v2930_v0 }
 0x758   : > { %2520 = vmatpush3.bf16.msra.mxu1 %v2814_v22 }
 0x759   : > { %2521 = vmatprep.subr.bf16.mxu1 %v2930_v0 }
 0x75a   : > { %2508 = vmatpush3.bf16.msra.mxu0 %v2810_v17 }
 0x75b   : > { %2509 = vmatprep.subr.bf16.mxu0 %v2930_v0 }
 0x75c   : > { %2522 = vmatpush3.bf16.msra.mxu1 %v2815_v23 }
 0x75d   : > { %2523 = vmatprep.subr.bf16.mxu1 %v2930_v0 }
 0x75e   : > { %2510 = vmatpush3.bf16.msra.mxu0 %v2096_v19 }
 0x760   : > { %2524 = vmatpush3.bf16.msra.mxu1 %v2816_v24 }
 0x761   : > { %2525 = vmatprep.subr.bf16.mxu1 %v2930_v0  ;;  %v2817_v0 = vld [vmem:[%s3682_s13 + $0x28] ss:$0 sps:$4 sm:$0x33]  }
 0x762   : > { %v2188_v42 = vsel %vm1425_vm13, %v2817_v0, 0 }
 0x764   : > { %2526 = vmatpush3.bf16.msra.mxu1 %v2188_v42 }
 0x7fe   : > { %v2473_v25 = vpop.f32.mrb[12].mxu1 }
 0x7ff   : > { %v2474_v26 = vpop.f32.mrb[13].mxu1 }
 0x800   : > { %v2475_v27 = vadd.f32 %v2474_v26, %v2473_v25  ;;  %v2476_v28 = vpop.f32.mrb[14].mxu1 }
 0x801   : > { %v2477_v29 = vpop.f32.mrb[15].mxu1 }
 0x802   : > { %v1984_v31 = vadd.f32 %v2475_v27, %v1794_v30 }
 0x822   : > { %v2023_v32 = vpop.f32.mrb[16].mxu1 }
 0x823   : > { %v2024_v34 = vadd.f32 %v2023_v32, %v1984_v31  ;;  %v2025_v37 = vpop.f32.mrb[17].mxu1 }
 0x824   : > { %v2026_v39 = vpop.f32.mrb[18].mxu1 }
 0x825   : > { %v2044_v40 = vpack.c.bf16 %v2024_v34, %v2024_v34  ;;  %v2027_v41 = vpop.f32.mrb[19].mxu1 }
 0x827   : > { %2512 = vmatmul.mubr.msk.bf16.vlgmr.msra.gmra.mrb[16].mxu0 %vm2091_vm5, %v2044_v40 }
 0x8fa   : > { %v2132_v44 = vpop.f32.mrb[16].mxu0 }
 0x8fb   : > { %v2133_v45 = vadd.f32 %v2132_v44, %v2045_v43  ;;  %v2513_v46 = vpop.f32.mrb[17].mxu0 }
 0x8fc   : > { %v2135_v47 = vpop.f32.mrb[18].mxu0 }
 0x8fd   : > { %v2149_v48 = vpack.c.bf16 %v2133_v45, %v2133_v45  ;;  %v2514_v49 = vpop.f32.mrb[19].mxu0 }
 0x8ff   : > { %2528 = vmatmul.mubr.msk.bf16.vlgmr.msra.gmra.mrb[20].mxu1 %vm600_vm4, %v2149_v48 }
 0x9d2   : > { %v2224_v51 = vpop.f32.mrb[20].mxu1 }
 0x9d3   : > { %v2225_v52 = vadd.f32 %v2224_v51, %v2150_v50  ;;  %v2529_v53 = vpop.f32.mrb[21].mxu1 }
 0x9d4   : > { %v2227_v54 = vpop.f32.mrb[22].mxu1 }
 0x9d5   : > { %v2530_v55 = vpop.f32.mrb[23].mxu1  ;;  %2231 = vst.msk [vmem:[%s486_s27] sm:$0x1] %vm2230_vm6, %v2225_v52 }
 0x9d6   : > { %2879 = shalt.err (!%p2876_p3)
}
 0x9d7   : > { %s2880_s25 = scalar_lea.hbm %s3627_s16, 16  ;;  %s2884_s27 = scalar_lea.hbm %s3684_s15, 32 }
 0x9d8   : > { %p2881_p4 = scmp.ne.s32.totalorder %s3627_s16, %s2880_s25  ;;  %p2885_p9 = scmp.lt.u32.totalorder %s3627_s16, %s3684_s15 }
 0x9d9   : > { %p2886_p10 = scmp.lt.u32.totalorder %s2884_s27, %s2880_s25  ;;  %p2888_p12 = scmp.lt.u32.totalorder %s2880_s25, %s3627_s16 }
 0x9da   : > { %p2882_p7 = pnand %p2881_p4, %p3061_p5 }
 0x9db   : > { %p2887_p11 = por %p2886_p10, %p2885_p9 }
 0x9dc   : > { %p2883_p8 = pneg %p2882_p7 }
 0x9dd   : > { %p2889_p13 = por %p2888_p12, %p2887_p11 }
 0x9df   : > { %p2890_p0 = pnand %p2889_p13, %p2883_p8 }
 0x9e1   : > { %2893 = shalt.err (!%p2890_p0)
}
 0x9e2   : > { %2539 = dma.vmem_to_hbm [thread:$0]  (%p3061_p5), %s3629_s29, 16, %s3627_s16, %s2233_s22  }
 0x9e3 PF: > { %s3699_s17 = sld [smem:[#allocation8_spill]]  ;;  %s3700_s23 = sld [smem:[#allocation6_spill]] }
 0x9e9   : > { %p2545_p1 = scmp.ge.s32.totalorder %s3699_s17, 2  ;;  %s2257_s21 = sand.u32 1, %s3700_s23  }
 0x9ea   : > { %s2258_s20 = scalar_lea.sflag [#allocation4], %s2257_s21 }
 0x9eb   : > { %p2542_p2 = pnand %p2545_p1, %p3065_p6 }
 0x9ed   : > { %2911 = dma.done.wait (!%p2542_p2), %s2258_s20, 16  }
 0x9ee   : > { %2913 = vsyncadd (!%p2542_p2), %s2258_s20, 4294967280  ;;  %s3702_s21 = sld [smem:[#allocation9_spill]]  ;;  %s3703_s25 = sld [smem:[#allocation7_spill]] }
 0x9ef   : > { %s3704_s20 = sld [smem:[#allocation10_spill]]  ;;  %s3705_s18 = smov %s2920_s19 }
 0x9f4   : > { %p25_p3 = scmp.ge.s32.totalorder %s3702_s21, 4   ;;  %s3706_s19 = smov %s3703_s25 }
 0x9f6   :  { %27 = sbr.rel (!%p25_p3) target bundleno = 3 (0x3), region = 115 }
 0x9fd   :  { %2262 = vsyncpa [#allocation4], 1 }
 0x9fe   :  { %2264 = vsyncpa [#allocation4 + $0x1], 1 }

</bundles_post_ra>
